<compile_context>
chip_gen: v7x
topology: tpu7x:2x2x1
jax: 0.10.0
libtpu: 0.0.40
codegen_flags: <defaults>
</compile_context>

<pallas_src>
import functools

import numpy as np
import jax
import jax.numpy as jnp
from jax.experimental import pallas as pl
from jax.experimental.pallas import tpu as pltpu

H = W = 8
S = H * W            # 64 board squares
C1 = 64              # conv1 output channels
F1 = 256             # fc1 hidden size
SC = S * C1          # 4096: flattened conv1 features (spatial-major, channel-minor)
XIN = 2 * S          # 128: board (64) + ones lane (1, carries conv1 bias) + zero pad
OUT_PAD = 128        # lane-dense padded width of the h2 / output chain (true width 64)
CHUNK = 512          # chunk of the 4096-wide conv1->conv2 contraction
N_CHUNKS = SC // CHUNK


def reversi_kernel(x_ref, gw1_ref, k2_ref, b2_ref, wf1_ref, bf1_ref,
                   wf2_ref, bf2_ref, out_ref):
    x = x_ref[...]                                   # (TB, 128) bf16, lane 64 == 1.0
    tb = x.shape[0]
    cdt = x.dtype                                    # matmul operand dtype (bf16)

    # conv1 (1->64, 3x3, pad 1, bias folded via the ones lane) fused with
    # conv2 (64->1, 3x3, pad 1) by chunking the 4096-wide contraction so the
    # (TB, 4096) intermediate never materializes.
    h2 = jnp.zeros((tb, OUT_PAD), jnp.float32)
    for c in range(N_CHUNKS):                        # static unroll (8 chunks)
        sl = pl.ds(c * CHUNK, CHUNK)
        h1c = jnp.dot(x, gw1_ref[:, sl],
                      preferred_element_type=jnp.float32)
        h1c = jnp.maximum(h1c, 0.0)                  # conv1 ReLU (f32)
        h2 = h2 + jnp.dot(h1c.astype(cdt), k2_ref[sl, :],
                          preferred_element_type=jnp.float32)
    h2 = jnp.maximum(h2 + b2_ref[0, 0], 0.0)         # conv2 bias + ReLU (f32)
    # h2[:, :64] == flatten(conv2 out); padded lanes feed zero rows of wf1.

    # fc1 + ReLU
    z1 = jnp.dot(h2.astype(cdt), wf1_ref[...],
                 preferred_element_type=jnp.float32)
    z1 = jnp.maximum(z1 + bf1_ref[...], 0.0)         # (TB, 256) f32

    # fc2 (padded to 128 output lanes -> lane-dense, unmasked stores)
    out_ref[...] = (jnp.dot(z1.astype(cdt), wf2_ref[...],
                            preferred_element_type=jnp.float32)
                    + bf2_ref[...])                  # (TB, 128) f32


def _const_spec(shape, index_map):
    """Grid-invariant weight/bias block: fetched once (constant index_map);
    single-buffered when the installed Pallas exposes pipeline_mode, else a
    plain (double-buffered) BlockSpec."""
    try:
        return pl.BlockSpec(shape, index_map,
                            pipeline_mode=pl.Buffered(buffer_count=1))
    except (TypeError, AttributeError):
        return pl.BlockSpec(shape, index_map)


def prepare_weights(params, compute_dtype=jnp.bfloat16):
    """One-time host-side fold of the two zero-padded 3x3 convolutions on the
    8x8 board into dense matmul weights, plus all padding / transposes / dtype
    casts.  Call once; reuse the returned tuple for every forward pass."""
    w1 = np.asarray(params["conv1_w"], np.float32)   # (64, 1, 3, 3)
    b1 = np.asarray(params["conv1_b"], np.float32)   # (64,)
    w2 = np.asarray(params["conv2_w"], np.float32)   # (1, 64, 3, 3)

    gw1 = np.zeros((XIN, SC), np.float32)            # x_aug(.,128) -> h1(.,4096)
    k2 = np.zeros((SC, OUT_PAD), np.float32)         # h1(.,4096)   -> h2(.,128)
    for i in range(H):
        for j in range(W):
            s = i * W + j
            for dh in (-1, 0, 1):
                for dw in (-1, 0, 1):
                    ii, jj = i + dh, j + dw
                    if 0 <= ii < H and 0 <= jj < W:
                        sp = ii * W + jj
                        # h1[b, s*64+c] += x[b, sp] * w1[c, 0, dh+1, dw+1]
                        gw1[sp, s * C1:(s + 1) * C1] += w1[:, 0, dh + 1, dw + 1]
                        # h2[b, s] += h1[b, sp*64+c] * w2[0, c, dh+1, dw+1]
                        k2[sp * C1:(sp + 1) * C1, s] += w2[0, :, dh + 1, dw + 1]
    gw1[S, :] = np.tile(b1, S)       # conv1 bias rides on the ones lane of x_aug

    wf1 = np.zeros((XIN, F1), np.float32)            # zero rows for h2's pad lanes
    wf1[:S, :] = np.asarray(params["fc1_w"], np.float32).T
    wf2 = np.zeros((F1, OUT_PAD), np.float32)        # zero cols -> zero pad outputs
    wf2[:, :S] = np.asarray(params["fc2_w"], np.float32).T
    bf2 = np.zeros((1, OUT_PAD), np.float32)
    bf2[0, :S] = np.asarray(params["fc2_b"], np.float32)

    return (
        jnp.asarray(gw1, compute_dtype),                              # folded conv1 (+bias row)
        jnp.asarray(k2, compute_dtype),                               # folded conv2 (lane padded)
        jnp.asarray(params["conv2_b"], jnp.float32).reshape(1, 1),    # conv2 bias scalar (SMEM)
        jnp.asarray(wf1, compute_dtype),                              # fc1 weight
        jnp.asarray(params["fc1_b"], jnp.float32).reshape(1, F1),     # fc1 bias (f32)
        jnp.asarray(wf2, compute_dtype),                              # fc2 weight
        jnp.asarray(bf2, jnp.float32),                                # fc2 bias (f32, padded)
    )


def _choose_tb(B):
    # Up to 512-row tiles (amortizes the ~0.35us/grid-step overhead, fills MXU
    # M) while guaranteeing >= 2 grid steps for B > 8 so v7x's two TensorCores
    # both get a share of the batch.  Per-tile VMEM stays ~8 MiB on all gens.
    if B <= 8:
        return 8
    half = -(-((B + 1) // 2) // 8) * 8      # round_up(cdiv(B, 2), 8)
    return min(512, half)


@functools.partial(jax.jit, static_argnames=("tb",))
def _reversi_forward(x_nchw, prep, *, tb):
    gw1, k2, b2, wf1, bf1, wf2, bf2 = prep
    cdt = gw1.dtype
    B = x_nchw.shape[0]
    b_pad = -(-B // tb) * tb
    grid = (b_pad // tb,)

    # NCHW (B,1,8,8) -> (b_pad, 128): board flattened row-major onto lanes
    # 0..63, lane 64 = 1.0 (carries the folded conv1 bias), lanes 65..127 = 0.
    x_aug = jnp.zeros((b_pad, XIN), cdt)
    x_aug = x_aug.at[:B, :S].set(x_nchw.reshape(B, S).astype(cdt))
    x_aug = x_aug.at[:, S].set(jnp.asarray(1.0, cdt))

    inv = lambda i: (0, 0)       # grid-invariant blocks: DMA'd once
    out = pl.pallas_call(
        reversi_kernel,
        out_shape=jax.ShapeDtypeStruct((b_pad, OUT_PAD), jnp.float32),
        grid=grid,
        in_specs=[
            pl.BlockSpec((tb, XIN), lambda i: (i, 0)),           # board tile (lane-dense)
            _const_spec((XIN, SC), inv),                         # folded conv1 + bias row
            _const_spec((SC, OUT_PAD), inv),                     # folded conv2 (padded)
            pl.BlockSpec(memory_space=pltpu.MemorySpace.SMEM),   # conv2 bias scalar
            _const_spec((XIN, F1), inv),                         # fc1 weight
            _const_spec((1, F1), inv),                           # fc1 bias (f32)
            _const_spec((F1, OUT_PAD), inv),                     # fc2 weight (padded)
            _const_spec((1, OUT_PAD), inv),                      # fc2 bias (f32, padded)
        ],
        out_specs=pl.BlockSpec((tb, OUT_PAD), lambda i: (i, 0)),
        compiler_params=pltpu.CompilerParams(
            dimension_semantics=("parallel",),
            vmem_limit_bytes=32 * 1024 * 1024),
    )(x_aug, gw1, k2, b2, wf1, bf1, wf2, bf2)
    return out[:B, :S]


def reversi_net_pallas(x_nchw, prep, *, tb=None):
    B = x_nchw.shape[0]
    if tb is None:
        tb = _choose_tb(B)
    return _reversi_forward(x_nchw, prep, tb=int(tb))


def init_params(key):
    # Deterministic synthetic parameters with PyTorch-native shapes.
    ks = jax.random.split(key, 8)

    def rnd(k, shape, scale=0.1):
        return scale * jax.random.normal(k, shape, jnp.float32)

    return {
        "conv1_w": rnd(ks[0], (64, 1, 3, 3)),   # (Cout, Cin, KH, KW)
        "conv1_b": rnd(ks[1], (64,)),
        "conv2_w": rnd(ks[2], (1, 64, 3, 3)),
        "conv2_b": rnd(ks[3], (1,)),
        "fc1_w": rnd(ks[4], (256, 64)),         # torch Linear: y = x @ W.T + b
        "fc1_b": rnd(ks[5], (256,)),
        "fc2_w": rnd(ks[6], (64, 256)),
        "fc2_b": rnd(ks[7], (64,)),
    }


def reversi_net_ref(x_nchw, params):
    # Pure-JAX f32 reference with identical semantics to the PyTorch forward.
    B = x_nchw.shape[0]
    xp = jnp.pad(x_nchw[:, 0].astype(jnp.float32), ((0, 0), (1, 1), (1, 1)))
    w1 = params["conv1_w"]
    h1 = jnp.zeros((B, 8, 8, 64), jnp.float32)
    for kh in range(3):
        for kw in range(3):
            h1 = h1 + xp[:, kh:kh + 8, kw:kw + 8][..., None] \
                 * w1[:, 0, kh, kw][None, None, None, :]
    h1 = jax.nn.relu(h1 + params["conv1_b"][None, None, None, :])
    h1p = jnp.pad(h1, ((0, 0), (1, 1), (1, 1), (0, 0)))
    w2 = params["conv2_w"]
    h2 = jnp.zeros((B, 8, 8), jnp.float32)
    for kh in range(3):
        for kw in range(3):
            h2 = h2 + jnp.sum(h1p[:, kh:kh + 8, kw:kw + 8, :]
                              * w2[0, :, kh, kw][None, None, None, :], axis=-1)
    h2 = jax.nn.relu(h2 + params["conv2_b"][0])
    flat = h2.reshape(B, 64)                         # == torch .view(B, -1)
    z1 = jax.nn.relu(flat @ params["fc1_w"].T + params["fc1_b"])
    return z1 @ params["fc2_w"].T + params["fc2_b"]


if __name__ == "__main__":
    key = jax.random.PRNGKey(0)
    pkey, xkey = jax.random.split(key)
    params = init_params(pkey)
    prep = prepare_weights(params)    # one-time fold/pad/cast (hoisted out of the forward)

    # Reversi-style boards: values in {-1, 0, 1}, NCHW (B, 1, 8, 8).
    B = 2
    x = jax.random.randint(xkey, (B, 1, H, W), -1, 2).astype(jnp.float32)

    out = jax.block_until_ready(reversi_net_pallas(x, prep))
    ref = jax.block_until_ready(reversi_net_ref(x, params))
    assert out.shape == (B, S)
    # bf16 matmul operands (f32 accumulation) -> slightly looser tolerance.
    np.testing.assert_allclose(np.asarray(out), np.asarray(ref),
                               rtol=3e-2, atol=2e-2)

    # Exercise the multi-tile grid + partial-tile padding path (3 tiles of 8 rows).
    B2 = 20
    x2 = jax.random.randint(jax.random.PRNGKey(1), (B2, 1, H, W),
                            -1, 2).astype(jnp.float32)
    out2 = jax.block_until_ready(reversi_net_pallas(x2, prep, tb=8))
    ref2 = jax.block_until_ready(reversi_net_ref(x2, params))
    np.testing.assert_allclose(np.asarray(out2), np.asarray(ref2),
                               rtol=3e-2, atol=2e-2)

    print("KERNEL_OK")
</pallas_src>

<mosaic_0001>
module attributes {stable_mosaic.version = 11 : i64} {
  func.func @reversi_kernel(%arg0: i32, %arg1: memref<8x128xbf16, #tpu.memory_space<vmem>>, %arg2: memref<128x4096xbf16, #tpu.memory_space<vmem>>, %arg3: memref<4096x128xbf16, #tpu.memory_space<vmem>>, %arg4: memref<1x1xf32, #tpu.memory_space<smem>>, %arg5: memref<128x256xbf16, #tpu.memory_space<vmem>>, %arg6: memref<1x256xf32, #tpu.memory_space<vmem>>, %arg7: memref<256x128xbf16, #tpu.memory_space<vmem>>, %arg8: memref<1x128xf32, #tpu.memory_space<vmem>>, %arg9: memref<8x128xf32, #tpu.memory_space<vmem>>) attributes {dimension_semantics = [#tpu.dimension_semantics<parallel>], iteration_bounds = array<i64: 1>, scalar_prefetch = 0 : i64, scratch_operands = 0 : i64, tpu.core_type = #tpu.core_type<tc>, window_params = [{transform_indices = @transform_0, window_bounds = array<i64: 8, 128>}, {pipeline_mode = #tpu.pipeline_mode<synchronous>, transform_indices = @transform_1, window_bounds = array<i64: 128, 4096>}, {pipeline_mode = #tpu.pipeline_mode<synchronous>, transform_indices = @transform_2, window_bounds = array<i64: 4096, 128>}, {transform_indices = @transform_3, window_bounds = array<i64: 1, 1>}, {pipeline_mode = #tpu.pipeline_mode<synchronous>, transform_indices = @transform_4, window_bounds = array<i64: 128, 256>}, {pipeline_mode = #tpu.pipeline_mode<synchronous>, transform_indices = @transform_5, window_bounds = array<i64: 1, 256>}, {pipeline_mode = #tpu.pipeline_mode<synchronous>, transform_indices = @transform_6, window_bounds = array<i64: 256, 128>}, {pipeline_mode = #tpu.pipeline_mode<synchronous>, transform_indices = @transform_7, window_bounds = array<i64: 1, 128>}, {transform_indices = @transform_8, window_bounds = array<i64: 8, 128>}]} {
    %c0 = arith.constant 0 : index
    %c0_0 = arith.constant 0 : index
    %0 = vector.load %arg1[%c0, %c0_0] : memref<8x128xbf16, #tpu.memory_space<vmem>>, vector<8x128xbf16>
    %cst = arith.constant 0.000000e+00 : f32
    %1 = vector.broadcast %cst : f32 to vector<8x128xf32>
    %c0_1 = arith.constant 0 : index
    %c0_2 = arith.constant 0 : index
    %2 = vector.load %arg2[%c0_1, %c0_2] : memref<128x4096xbf16, #tpu.memory_space<vmem>>, vector<128x512xbf16>
    %cst_3 = arith.constant dense<0.000000e+00> : vector<8x512xf32>
    %3 = tpu.matmul %0, %2, %cst_3 {dimension_numbers = #tpu.dot_dimension_numbers<[1], [0], [0], [1], [0, 0, 1, 1], [], []>} : vector<8x128xbf16>, vector<128x512xbf16>, vector<8x512xf32> -> vector<8x512xf32>
    %cst_4 = arith.constant 0.000000e+00 : f32
    %4 = vector.broadcast %cst_4 : f32 to vector<8x512xf32>
    %5 = arith.maximumf %3, %4 : vector<8x512xf32>
    %6 = arith.truncf %5 : vector<8x512xf32> to vector<8x512xbf16>
    %c0_5 = arith.constant 0 : index
    %c0_6 = arith.constant 0 : index
    %7 = vector.load %arg3[%c0_5, %c0_6] : memref<4096x128xbf16, #tpu.memory_space<vmem>>, vector<512x128xbf16>
    %cst_7 = arith.constant dense<0.000000e+00> : vector<8x128xf32>
    %8 = tpu.matmul %6, %7, %cst_7 {dimension_numbers = #tpu.dot_dimension_numbers<[1], [0], [0], [1], [0, 0, 1, 1], [], []>} : vector<8x512xbf16>, vector<512x128xbf16>, vector<8x128xf32> -> vector<8x128xf32>
    %9 = arith.addf %1, %8 : vector<8x128xf32>
    %c0_8 = arith.constant 0 : index
    %c512 = arith.constant 512 : index
    %10 = vector.load %arg2[%c0_8, %c512] : memref<128x4096xbf16, #tpu.memory_space<vmem>>, vector<128x512xbf16>
    %cst_9 = arith.constant dense<0.000000e+00> : vector<8x512xf32>
    %11 = tpu.matmul %0, %10, %cst_9 {dimension_numbers = #tpu.dot_dimension_numbers<[1], [0], [0], [1], [0, 0, 1, 1], [], []>} : vector<8x128xbf16>, vector<128x512xbf16>, vector<8x512xf32> -> vector<8x512xf32>
    %cst_10 = arith.constant 0.000000e+00 : f32
    %12 = vector.broadcast %cst_10 : f32 to vector<8x512xf32>
    %13 = arith.maximumf %11, %12 : vector<8x512xf32>
    %14 = arith.truncf %13 : vector<8x512xf32> to vector<8x512xbf16>
    %c512_11 = arith.constant 512 : index
    %c0_12 = arith.constant 0 : index
    %15 = vector.load %arg3[%c512_11, %c0_12] : memref<4096x128xbf16, #tpu.memory_space<vmem>>, vector<512x128xbf16>
    %cst_13 = arith.constant dense<0.000000e+00> : vector<8x128xf32>
    %16 = tpu.matmul %14, %15, %cst_13 {dimension_numbers = #tpu.dot_dimension_numbers<[1], [0], [0], [1], [0, 0, 1, 1], [], []>} : vector<8x512xbf16>, vector<512x128xbf16>, vector<8x128xf32> -> vector<8x128xf32>
    %17 = arith.addf %9, %16 : vector<8x128xf32>
    %c0_14 = arith.constant 0 : index
    %c1024 = arith.constant 1024 : index
    %18 = vector.load %arg2[%c0_14, %c1024] : memref<128x4096xbf16, #tpu.memory_space<vmem>>, vector<128x512xbf16>
    %cst_15 = arith.constant dense<0.000000e+00> : vector<8x512xf32>
    %19 = tpu.matmul %0, %18, %cst_15 {dimension_numbers = #tpu.dot_dimension_numbers<[1], [0], [0], [1], [0, 0, 1, 1], [], []>} : vector<8x128xbf16>, vector<128x512xbf16>, vector<8x512xf32> -> vector<8x512xf32>
    %cst_16 = arith.constant 0.000000e+00 : f32
    %20 = vector.broadcast %cst_16 : f32 to vector<8x512xf32>
    %21 = arith.maximumf %19, %20 : vector<8x512xf32>
    %22 = arith.truncf %21 : vector<8x512xf32> to vector<8x512xbf16>
    %c1024_17 = arith.constant 1024 : index
    %c0_18 = arith.constant 0 : index
    %23 = vector.load %arg3[%c1024_17, %c0_18] : memref<4096x128xbf16, #tpu.memory_space<vmem>>, vector<512x128xbf16>
    %cst_19 = arith.constant dense<0.000000e+00> : vector<8x128xf32>
    %24 = tpu.matmul %22, %23, %cst_19 {dimension_numbers = #tpu.dot_dimension_numbers<[1], [0], [0], [1], [0, 0, 1, 1], [], []>} : vector<8x512xbf16>, vector<512x128xbf16>, vector<8x128xf32> -> vector<8x128xf32>
    %25 = arith.addf %17, %24 : vector<8x128xf32>
    %c0_20 = arith.constant 0 : index
    %c1536 = arith.constant 1536 : index
    %26 = vector.load %arg2[%c0_20, %c1536] : memref<128x4096xbf16, #tpu.memory_space<vmem>>, vector<128x512xbf16>
    %cst_21 = arith.constant dense<0.000000e+00> : vector<8x512xf32>
    %27 = tpu.matmul %0, %26, %cst_21 {dimension_numbers = #tpu.dot_dimension_numbers<[1], [0], [0], [1], [0, 0, 1, 1], [], []>} : vector<8x128xbf16>, vector<128x512xbf16>, vector<8x512xf32> -> vector<8x512xf32>
    %cst_22 = arith.constant 0.000000e+00 : f32
    %28 = vector.broadcast %cst_22 : f32 to vector<8x512xf32>
    %29 = arith.maximumf %27, %28 : vector<8x512xf32>
    %30 = arith.truncf %29 : vector<8x512xf32> to vector<8x512xbf16>
    %c1536_23 = arith.constant 1536 : index
    %c0_24 = arith.constant 0 : index
    %31 = vector.load %arg3[%c1536_23, %c0_24] : memref<4096x128xbf16, #tpu.memory_space<vmem>>, vector<512x128xbf16>
    %cst_25 = arith.constant dense<0.000000e+00> : vector<8x128xf32>
    %32 = tpu.matmul %30, %31, %cst_25 {dimension_numbers = #tpu.dot_dimension_numbers<[1], [0], [0], [1], [0, 0, 1, 1], [], []>} : vector<8x512xbf16>, vector<512x128xbf16>, vector<8x128xf32> -> vector<8x128xf32>
    %33 = arith.addf %25, %32 : vector<8x128xf32>
    %c0_26 = arith.constant 0 : index
    %c2048 = arith.constant 2048 : index
    %34 = vector.load %arg2[%c0_26, %c2048] : memref<128x4096xbf16, #tpu.memory_space<vmem>>, vector<128x512xbf16>
    %cst_27 = arith.constant dense<0.000000e+00> : vector<8x512xf32>
    %35 = tpu.matmul %0, %34, %cst_27 {dimension_numbers = #tpu.dot_dimension_numbers<[1], [0], [0], [1], [0, 0, 1, 1], [], []>} : vector<8x128xbf16>, vector<128x512xbf16>, vector<8x512xf32> -> vector<8x512xf32>
    %cst_28 = arith.constant 0.000000e+00 : f32
    %36 = vector.broadcast %cst_28 : f32 to vector<8x512xf32>
    %37 = arith.maximumf %35, %36 : vector<8x512xf32>
    %38 = arith.truncf %37 : vector<8x512xf32> to vector<8x512xbf16>
    %c2048_29 = arith.constant 2048 : index
    %c0_30 = arith.constant 0 : index
    %39 = vector.load %arg3[%c2048_29, %c0_30] : memref<4096x128xbf16, #tpu.memory_space<vmem>>, vector<512x128xbf16>
    %cst_31 = arith.constant dense<0.000000e+00> : vector<8x128xf32>
    %40 = tpu.matmul %38, %39, %cst_31 {dimension_numbers = #tpu.dot_dimension_numbers<[1], [0], [0], [1], [0, 0, 1, 1], [], []>} : vector<8x512xbf16>, vector<512x128xbf16>, vector<8x128xf32> -> vector<8x128xf32>
    %41 = arith.addf %33, %40 : vector<8x128xf32>
    %c0_32 = arith.constant 0 : index
    %c2560 = arith.constant 2560 : index
    %42 = vector.load %arg2[%c0_32, %c2560] : memref<128x4096xbf16, #tpu.memory_space<vmem>>, vector<128x512xbf16>
    %cst_33 = arith.constant dense<0.000000e+00> : vector<8x512xf32>
    %43 = tpu.matmul %0, %42, %cst_33 {dimension_numbers = #tpu.dot_dimension_numbers<[1], [0], [0], [1], [0, 0, 1, 1], [], []>} : vector<8x128xbf16>, vector<128x512xbf16>, vector<8x512xf32> -> vector<8x512xf32>
    %cst_34 = arith.constant 0.000000e+00 : f32
    %44 = vector.broadcast %cst_34 : f32 to vector<8x512xf32>
    %45 = arith.maximumf %43, %44 : vector<8x512xf32>
    %46 = arith.truncf %45 : vector<8x512xf32> to vector<8x512xbf16>
    %c2560_35 = arith.constant 2560 : index
    %c0_36 = arith.constant 0 : index
    %47 = vector.load %arg3[%c2560_35, %c0_36] : memref<4096x128xbf16, #tpu.memory_space<vmem>>, vector<512x128xbf16>
    %cst_37 = arith.constant dense<0.000000e+00> : vector<8x128xf32>
    %48 = tpu.matmul %46, %47, %cst_37 {dimension_numbers = #tpu.dot_dimension_numbers<[1], [0], [0], [1], [0, 0, 1, 1], [], []>} : vector<8x512xbf16>, vector<512x128xbf16>, vector<8x128xf32> -> vector<8x128xf32>
    %49 = arith.addf %41, %48 : vector<8x128xf32>
    %c0_38 = arith.constant 0 : index
    %c3072 = arith.constant 3072 : index
    %50 = vector.load %arg2[%c0_38, %c3072] : memref<128x4096xbf16, #tpu.memory_space<vmem>>, vector<128x512xbf16>
    %cst_39 = arith.constant dense<0.000000e+00> : vector<8x512xf32>
    %51 = tpu.matmul %0, %50, %cst_39 {dimension_numbers = #tpu.dot_dimension_numbers<[1], [0], [0], [1], [0, 0, 1, 1], [], []>} : vector<8x128xbf16>, vector<128x512xbf16>, vector<8x512xf32> -> vector<8x512xf32>
    %cst_40 = arith.constant 0.000000e+00 : f32
    %52 = vector.broadcast %cst_40 : f32 to vector<8x512xf32>
    %53 = arith.maximumf %51, %52 : vector<8x512xf32>
    %54 = arith.truncf %53 : vector<8x512xf32> to vector<8x512xbf16>
    %c3072_41 = arith.constant 3072 : index
    %c0_42 = arith.constant 0 : index
    %55 = vector.load %arg3[%c3072_41, %c0_42] : memref<4096x128xbf16, #tpu.memory_space<vmem>>, vector<512x128xbf16>
    %cst_43 = arith.constant dense<0.000000e+00> : vector<8x128xf32>
    %56 = tpu.matmul %54, %55, %cst_43 {dimension_numbers = #tpu.dot_dimension_numbers<[1], [0], [0], [1], [0, 0, 1, 1], [], []>} : vector<8x512xbf16>, vector<512x128xbf16>, vector<8x128xf32> -> vector<8x128xf32>
    %57 = arith.addf %49, %56 : vector<8x128xf32>
    %c0_44 = arith.constant 0 : index
    %c3584 = arith.constant 3584 : index
    %58 = vector.load %arg2[%c0_44, %c3584] : memref<128x4096xbf16, #tpu.memory_space<vmem>>, vector<128x512xbf16>
    %cst_45 = arith.constant dense<0.000000e+00> : vector<8x512xf32>
    %59 = tpu.matmul %0, %58, %cst_45 {dimension_numbers = #tpu.dot_dimension_numbers<[1], [0], [0], [1], [0, 0, 1, 1], [], []>} : vector<8x128xbf16>, vector<128x512xbf16>, vector<8x512xf32> -> vector<8x512xf32>
    %cst_46 = arith.constant 0.000000e+00 : f32
    %60 = vector.broadcast %cst_46 : f32 to vector<8x512xf32>
    %61 = arith.maximumf %59, %60 : vector<8x512xf32>
    %62 = arith.truncf %61 : vector<8x512xf32> to vector<8x512xbf16>
    %c3584_47 = arith.constant 3584 : index
    %c0_48 = arith.constant 0 : index
    %63 = vector.load %arg3[%c3584_47, %c0_48] : memref<4096x128xbf16, #tpu.memory_space<vmem>>, vector<512x128xbf16>
    %cst_49 = arith.constant dense<0.000000e+00> : vector<8x128xf32>
    %64 = tpu.matmul %62, %63, %cst_49 {dimension_numbers = #tpu.dot_dimension_numbers<[1], [0], [0], [1], [0, 0, 1, 1], [], []>} : vector<8x512xbf16>, vector<512x128xbf16>, vector<8x128xf32> -> vector<8x128xf32>
    %65 = arith.addf %57, %64 : vector<8x128xf32>
    %c0_50 = arith.constant 0 : index
    %c0_51 = arith.constant 0 : index
    %66 = memref.load %arg4[%c0_50, %c0_51] : memref<1x1xf32, #tpu.memory_space<smem>>
    %67 = vector.broadcast %66 : f32 to vector<8x128xf32>
    %68 = arith.addf %65, %67 : vector<8x128xf32>
    %cst_52 = arith.constant 0.000000e+00 : f32
    %69 = vector.broadcast %cst_52 : f32 to vector<8x128xf32>
    %70 = arith.maximumf %68, %69 : vector<8x128xf32>
    %71 = arith.truncf %70 : vector<8x128xf32> to vector<8x128xbf16>
    %c0_53 = arith.constant 0 : index
    %c0_54 = arith.constant 0 : index
    %72 = vector.load %arg5[%c0_53, %c0_54] : memref<128x256xbf16, #tpu.memory_space<vmem>>, vector<128x256xbf16>
    %cst_55 = arith.constant dense<0.000000e+00> : vector<8x256xf32>
    %73 = tpu.matmul %71, %72, %cst_55 {dimension_numbers = #tpu.dot_dimension_numbers<[1], [0], [0], [1], [0, 0, 1, 1], [], []>} : vector<8x128xbf16>, vector<128x256xbf16>, vector<8x256xf32> -> vector<8x256xf32>
    %c0_56 = arith.constant 0 : index
    %c0_57 = arith.constant 0 : index
    %74 = vector.load %arg6[%c0_56, %c0_57] : memref<1x256xf32, #tpu.memory_space<vmem>>, vector<1x256xf32>
    %75 = vector.broadcast %74 : vector<1x256xf32> to vector<8x256xf32>
    %76 = arith.addf %73, %75 : vector<8x256xf32>
    %cst_58 = arith.constant 0.000000e+00 : f32
    %77 = vector.broadcast %cst_58 : f32 to vector<8x256xf32>
    %78 = arith.maximumf %76, %77 : vector<8x256xf32>
    %79 = arith.truncf %78 : vector<8x256xf32> to vector<8x256xbf16>
    %c0_59 = arith.constant 0 : index
    %c0_60 = arith.constant 0 : index
    %80 = vector.load %arg7[%c0_59, %c0_60] : memref<256x128xbf16, #tpu.memory_space<vmem>>, vector<256x128xbf16>
    %cst_61 = arith.constant dense<0.000000e+00> : vector<8x128xf32>
    %81 = tpu.matmul %79, %80, %cst_61 {dimension_numbers = #tpu.dot_dimension_numbers<[1], [0], [0], [1], [0, 0, 1, 1], [], []>} : vector<8x256xbf16>, vector<256x128xbf16>, vector<8x128xf32> -> vector<8x128xf32>
    %c0_62 = arith.constant 0 : index
    %c0_63 = arith.constant 0 : index
    %82 = vector.load %arg8[%c0_62, %c0_63] : memref<1x128xf32, #tpu.memory_space<vmem>>, vector<1x128xf32>
    %83 = vector.broadcast %82 : vector<1x128xf32> to vector<8x128xf32>
    %84 = arith.addf %81, %83 : vector<8x128xf32>
    %c0_64 = arith.constant 0 : index
    %c0_65 = arith.constant 0 : index
    %85 = vector.load %arg9[%c0_64, %c0_65] : memref<8x128xf32, #tpu.memory_space<vmem>>, vector<8x128xf32>
    tpu.vector_store %arg9[%c0_64, %c0_65], %84 {strides = array<i32>} : memref<8x128xf32, #tpu.memory_space<vmem>>, vector<8x128xf32>,
    return
  }
  func.func @transform_0(%arg0: i32) -> (i32, i32) {
    %c0_i32 = arith.constant 0 : i32
    %c0_i32_0 = arith.constant 0 : i32
    return %arg0, %c0_i32 : i32, i32
  }
  func.func @transform_1(%arg0: i32) -> (i32, i32) {
    %c0_i32 = arith.constant 0 : i32
    %c0_i32_0 = arith.constant 0 : i32
    %c0_i32_1 = arith.constant 0 : i32
    return %c0_i32, %c0_i32_0 : i32, i32
  }
  func.func @transform_2(%arg0: i32) -> (i32, i32) {
    %c0_i32 = arith.constant 0 : i32
    %c0_i32_0 = arith.constant 0 : i32
    %c0_i32_1 = arith.constant 0 : i32
    return %c0_i32, %c0_i32_0 : i32, i32
  }
  func.func @transform_3(%arg0: i32) -> (i32, i32) {
    %c0_i32 = arith.constant 0 : i32
    %c0_i32_0 = arith.constant 0 : i32
    %c0_i32_1 = arith.constant 0 : i32
    return %c0_i32, %c0_i32_0 : i32, i32
  }
  func.func @transform_4(%arg0: i32) -> (i32, i32) {
    %c0_i32 = arith.constant 0 : i32
    %c0_i32_0 = arith.constant 0 : i32
    %c0_i32_1 = arith.constant 0 : i32
    return %c0_i32, %c0_i32_0 : i32, i32
  }
  func.func @transform_5(%arg0: i32) -> (i32, i32) {
    %c0_i32 = arith.constant 0 : i32
    %c0_i32_0 = arith.constant 0 : i32
    %c0_i32_1 = arith.constant 0 : i32
    return %c0_i32, %c0_i32_0 : i32, i32
  }
  func.func @transform_6(%arg0: i32) -> (i32, i32) {
    %c0_i32 = arith.constant 0 : i32
    %c0_i32_0 = arith.constant 0 : i32
    %c0_i32_1 = arith.constant 0 : i32
    return %c0_i32, %c0_i32_0 : i32, i32
  }
  func.func @transform_7(%arg0: i32) -> (i32, i32) {
    %c0_i32 = arith.constant 0 : i32
    %c0_i32_0 = arith.constant 0 : i32
    %c0_i32_1 = arith.constant 0 : i32
    return %c0_i32, %c0_i32_0 : i32, i32
  }
  func.func @transform_8(%arg0: i32) -> (i32, i32) {
    %c0_i32 = arith.constant 0 : i32
    %c0_i32_0 = arith.constant 0 : i32
    return %arg0, %c0_i32 : i32, i32
  }
}

</mosaic_0001>

<bundles_post_ra>
// kernel: _reversi_forward.1
= control target key start
LH: loop header
LB: loop body
LE: loop exit
PB: predicated region body
PF: predicated region fallthrough
CT: control target
= control target key end

     0   :  { %14 = vsyncpa [#allocation4], 0  ;;  %s6900_s0 = inlined_call_operand.vmem [shape: bf16[8,128], index: 0, kind: input, shape index: {}]   ;;  %s6901_s1 = inlined_call_operand.hbm [shape: bf16[128,4096], index: 1, kind: input, shape index: {}]   ;;  %s6902_s2 = inlined_call_operand.hbm [shape: bf16[4096,128], index: 2, kind: input, shape index: {}]   ;;  %s6903_s3 = inlined_call_operand.<no memory space> [shape: f32[1,1], index: 3, kind: input, shape index: {}]   ;;  %s6904_s4 = inlined_call_operand.hbm [shape: bf16[128,256], index: 4, kind: input, shape index: {}]   ;;  %s6905_s5 = inlined_call_operand.vmem [shape: f32[1,256], index: 5, kind: input, shape index: {}]   ;;  %s6906_s6 = inlined_call_operand.hbm [shape: bf16[256,128], index: 6, kind: input, shape index: {}]   ;;  %s6907_s7 = inlined_call_operand.vmem [shape: f32[1,128], index: 7, kind: input, shape index: {}]   ;;  %s6908_s8 = inlined_call_operand.vmem [shape: f32[8,128], index: 8, kind: output, shape index: {}]  }
   0x1   :  { %15 = vsyncpa [#allocation6], 0 }
   0x2   :  { %16 = vsyncpa [#allocation9], 0  ;;  %s6699_s27 = smov [#allocation5]   ;;  %s6605_s9 = scalar_lea.hbm %s6902_s2, 32768 }
   0x3   :  { %s36_s28 = sshll.u32 %s6699_s27, 4  ;;  %p6606_p0 = scmp.ne.s32.totalorder %s6902_s2, %s6605_s9  ;;  %s37_s28 = int_to_ptr.vmem [resolvable:$true] %s36_s28 }
   0x4   :  { %p6609_p1 = scmp.lt.u32.totalorder %s6605_s9, %s6902_s2 }
   0x6   :  { %p6611_p2 = pnand %p6609_p1, %p6606_p0 }
   0x8   :  { %6614 = shalt.err (!%p6611_p2)
}
   0x9   :  { %s6615_s14 = scalar_lea.vmem %s37_s28, 32768  ;;  %p6620_p4 = scmp.lt.s32.totalorder %s37_s28, %s37_s28 }
   0xa   :  { %p6616_p3 = scmp.ne.s32.totalorder %s37_s28, %s6615_s14  ;;  %p6621_p5 = scmp.lt.s32.totalorder %s6615_s14, %s6615_s14 }
   0xc   :  { %p6622_p6 = por %p6621_p5, %p6620_p4 }
   0xe   :  { %p6623_p7 = pnand %p6622_p6, %p6616_p3 }
  0x10   :  { %6626 = shalt.err (!%p6623_p7)
}
  0x11   :  { %s6700_s15 = smov 64   ;;  %s6701_s16 = smov 4  }
  0x12   :  { %42 = dma.hbm_to_vmem [thread:$0]  %s6902_s2, 32768, %s37_s28, [#allocation6], %s6700_s15, %s6700_s15, %s6701_s16  }
  0x13   :  { %s6702_s19 = smov [#allocation3]   ;;  %s6627_s23 = scalar_lea.hbm %s6901_s1, 32768 }
  0x14   :  { %s24_s20 = sshll.u32 %s6702_s19, 4  ;;  %p6628_p8 = scmp.ne.s32.totalorder %s6901_s1, %s6627_s23  ;;  %s25_s20 = int_to_ptr.vmem [resolvable:$true] %s24_s20 }
  0x15   :  { %p6631_p9 = scmp.lt.u32.totalorder %s6627_s23, %s6901_s1 }
  0x17   :  { %p6633_p10 = pnand %p6631_p9, %p6628_p8 }
  0x19   :  { %6636 = shalt.err (!%p6633_p10)
}
  0x1a   :  { %s6637_s29 = scalar_lea.vmem %s25_s20, 32768  ;;  %p6642_p12 = scmp.lt.s32.totalorder %s25_s20, %s25_s20 }
  0x1b   :  { %p6638_p11 = scmp.ne.s32.totalorder %s25_s20, %s6637_s29  ;;  %p6643_p13 = scmp.lt.s32.totalorder %s6637_s29, %s6637_s29 }
  0x1d   :  { %p6644_p0 = por %p6643_p13, %p6642_p12 }
  0x1f   :  { %p6645_p1 = pnand %p6644_p0, %p6638_p11 }
  0x21   :  { %6648 = shalt.err (!%p6645_p1)
}
  0x22   :  { %s6703_s2 = smov 2048   ;;  %s6704_s28 = smov 128  }
  0x23   :  { %30 = dma.hbm_to_vmem [thread:$0]  %s6901_s1, 32768, %s25_s20, [#allocation4], %s6703_s2, %s6703_s2, %s6704_s28  }
  0x24   :  { %s6705_s10 = smov [#allocation7]   ;;  %s6706_s12 = smov [#allocation8]  }
  0x25   :  { %s50_s11 = sshll.u32 %s6705_s10, 4  ;;  %s64_s13 = sshll.u32 %s6706_s12, 4  ;;  %s51_s11 = int_to_ptr.vmem [resolvable:$true] %s50_s11  ;;  %s65_s13 = int_to_ptr.vmem [resolvable:$true] %s64_s13 }
  0x26   :  { %s6649_s18 = scalar_lea.hbm %s6904_s4, 2048 }
  0x27   :  { %p6650_p2 = scmp.ne.s32.totalorder %s6904_s4, %s6649_s18  ;;  %p6653_p3 = scmp.lt.u32.totalorder %s6649_s18, %s6904_s4 }
  0x29   :  { %p6655_p4 = pnand %p6653_p3, %p6650_p2 }
  0x2b   :  { %6658 = shalt.err (!%p6655_p4)
}
  0x2c   :  { %s6659_s1 = scalar_lea.vmem %s51_s11, 2048  ;;  %p6664_p6 = scmp.lt.s32.totalorder %s51_s11, %s51_s11 }
  0x2d   :  { %p6660_p5 = scmp.ne.s32.totalorder %s51_s11, %s6659_s1  ;;  %p6665_p7 = scmp.lt.s32.totalorder %s6659_s1, %s6659_s1 }
  0x2f   :  { %p6666_p8 = por %p6665_p7, %p6664_p6 }
  0x31   :  { %p6667_p9 = pnand %p6666_p8, %p6660_p5 }
  0x33   :  { %6670 = shalt.err (!%p6667_p9)
}
  0x34   :  { %s6707_s20 = smov 8   ;;  %s6671_s29 = scalar_lea.hbm %s6906_s6, 2048 }
  0x35   :  { %56 = dma.hbm_to_vmem [thread:$0]  %s6904_s4, 2048, %s51_s11, [#allocation6], %s6704_s28, %s6704_s28, %s6707_s20  }
  0x36   :  { %p6672_p10 = scmp.ne.s32.totalorder %s6906_s6, %s6671_s29  ;;  %p6675_p11 = scmp.lt.u32.totalorder %s6671_s29, %s6906_s6 }
  0x38   :  { %p6677_p12 = pnand %p6675_p11, %p6672_p10 }
  0x3a   :  { %6680 = shalt.err (!%p6677_p12)
}
  0x3b   :  { %s6681_s12 = scalar_lea.vmem %s65_s13, 2048  ;;  %p6686_p0 = scmp.lt.s32.totalorder %s65_s13, %s65_s13 }
  0x3c   :  { %p6682_p13 = scmp.ne.s32.totalorder %s65_s13, %s6681_s12  ;;  %p6687_p1 = scmp.lt.s32.totalorder %s6681_s12, %s6681_s12 }
  0x3e   :  { %p6688_p2 = por %p6687_p1, %p6686_p0 }
  0x40   :  { %p6689_p3 = pnand %p6688_p2, %p6682_p13 }
  0x42   :  { %6692 = shalt.err (!%p6689_p3)
}
  0x43   :  { %70 = dma.hbm_to_vmem [thread:$0]  %s6906_s6, 2048, %s65_s13, [#allocation9], %s6700_s15, %s6700_s15, %s6701_s16  }
  0x44   :  { %6693 = dma.done.wait [#allocation4], 32768  }
  0x45   :  { %6694 = vsyncadd [#allocation4], 4294934528 }
  0x46   :  { %6695 = dma.done.wait [#allocation6], 34816  }
  0x47   :  { %6696 = vsyncadd [#allocation6], 4294932480 }
  0x48   :  { %6697 = dma.done.wait [#allocation9], 2048  }
  0x49   :  { %6698 = vsyncadd [#allocation9], 4294965248  ;;  %v6708_v0 = vmov 0   ;;  %v87_v1 = vld [vmem:[#allocation3] sm:$0xff]  ;;  %v88_v3 = vld [vmem:[#allocation3 + $0x8] sm:$0xff] }
  0x4a   :  { %311 = vmatprep.mubr.bf16.mxu0 %v6708_v0  ;;  %352 = vmatprep.mubr.bf16.mxu1 %v6708_v0  ;;  %v89_v2 = vld [vmem:[#allocation3 + $0x80] sm:$0xff]  ;;  %v90_v5 = vld [vmem:[#allocation3 + $0x88] sm:$0xff]  ;;  %v433_v60 = vld [vmem:[#allocation3 + $0x10] sm:$0xff] }
  0x4b   :  { %v5379_v4 = vcombine.high %v87_v1, %v89_v2  ;;  %v5378_v6 = vcombine.low %v87_v1, %v89_v2  ;;  %v91_v7 = vld [vmem:[#allocation3 + $0x100] sm:$0xff]  ;;  %v5381_v9 = vcombine.high %v88_v3, %v90_v5  ;;  %v5380_v10 = vcombine.low %v88_v3, %v90_v5  ;;  %v92_v12 = vld [vmem:[#allocation3 + $0x108] sm:$0xff]  ;;  %v435_v61 = vld [vmem:[#allocation3 + $0x90] sm:$0xff] }
  0x4c   :  { %v93_v8 = vld [vmem:[#allocation3 + $0x180] sm:$0xff]  ;;  %v94_v13 = vld [vmem:[#allocation3 + $0x188] sm:$0xff]  ;;  %v434_v1 = vld [vmem:[#allocation3 + $0x18] sm:$0xff] }
  0x4d   :  { %v5383_v11 = vcombine.high %v91_v7, %v93_v8  ;;  %v95_v14 = vld [vmem:[#allocation3 + $0x200] sm:$0xff]  ;;  %279 = vmatprep.subr.bf16.mxu0 %v5379_v4  ;;  %v5385_v15 = vcombine.high %v92_v12, %v94_v13  ;;  %v96_v17 = vld [vmem:[#allocation3 + $0x208] sm:$0xff]  ;;  %320 = vmatprep.subr.bf16.mxu1 %v5381_v9  ;;  %v5382_v19 = vcombine.low %v91_v7, %v93_v8  ;;  %v436_v2 = vld [vmem:[#allocation3 + $0x98] sm:$0xff] }
  0x4e   :  { %v97_v16 = vld [vmem:[#allocation3 + $0x280] sm:$0xff]  ;;  %v98_v18 = vld [vmem:[#allocation3 + $0x288] sm:$0xff]  ;;  %280 = vmatpush1.bf16.msra.mxu0 %v5378_v6  ;;  %321 = vmatpush1.bf16.msra.mxu1 %v5380_v10  ;;  %v5384_v20 = vcombine.low %v92_v12, %v94_v13  ;;  %v437_v5 = vld [vmem:[#allocation3 + $0x110] sm:$0xff]  ;;  %v5411_v8 = vcombine.high %v433_v60, %v435_v61  ;;  %v5413_v12 = vcombine.high %v434_v1, %v436_v2 }
  0x4f   :  { %281 = vmatprep.subr.bf16.mxu0 %v5383_v11  ;;  %v5387_v21 = vcombine.high %v95_v14, %v97_v16  ;;  %322 = vmatprep.subr.bf16.mxu1 %v5385_v15  ;;  %v5389_v22 = vcombine.high %v96_v17, %v98_v18  ;;  %v99_v23 = vld [vmem:[#allocation3 + $0x300] sm:$0xff]  ;;  %v100_v25 = vld [vmem:[#allocation3 + $0x308] sm:$0xff]  ;;  %v5386_v27 = vcombine.low %v95_v14, %v97_v16  ;;  %v439_v6 = vld [vmem:[#allocation3 + $0x190] sm:$0xff] }
  0x50   :  { %v101_v24 = vld [vmem:[#allocation3 + $0x380] sm:$0xff]  ;;  %v102_v26 = vld [vmem:[#allocation3 + $0x388] sm:$0xff]  ;;  %v5388_v28 = vcombine.low %v96_v17, %v98_v18  ;;  %v438_v9 = vld [vmem:[#allocation3 + $0x118] sm:$0xff]  ;;  %v5410_v13 = vcombine.low %v433_v60, %v435_v61  ;;  %v5412_v16 = vcombine.low %v434_v1, %v436_v2  ;;  %v5415_v17 = vcombine.high %v437_v5, %v439_v6 }
  0x51   :  { %v5391_v29 = vcombine.high %v99_v23, %v101_v24  ;;  %v5393_v30 = vcombine.high %v100_v25, %v102_v26  ;;  %v103_v31 = vld [vmem:[#allocation3 + $0x400] sm:$0xff]  ;;  %v104_v33 = vld [vmem:[#allocation3 + $0x408] sm:$0xff]  ;;  %v5390_v35 = vcombine.low %v99_v23, %v101_v24  ;;  %v5392_v36 = vcombine.low %v100_v25, %v102_v26  ;;  %v440_v10 = vld [vmem:[#allocation3 + $0x198] sm:$0xff] }
  0x52   :  { %282 = vmatpush1.bf16.msra.mxu0 %v5382_v19  ;;  %323 = vmatpush1.bf16.msra.mxu1 %v5384_v20  ;;  %v105_v32 = vld [vmem:[#allocation3 + $0x480] sm:$0xff]  ;;  %v106_v34 = vld [vmem:[#allocation3 + $0x488] sm:$0xff]  ;;  %v441_v14 = vld [vmem:[#allocation3 + $0x210] sm:$0xff]  ;;  %v5417_v20 = vcombine.high %v438_v9, %v440_v10  ;;  %v5416_v24 = vcombine.low %v438_v9, %v440_v10 }
  0x53   :  { %283 = vmatprep.subr.bf16.mxu0 %v5387_v21  ;;  %324 = vmatprep.subr.bf16.mxu1 %v5389_v22  ;;  %v5395_v37 = vcombine.high %v103_v31, %v105_v32  ;;  %v5397_v38 = vcombine.high %v104_v33, %v106_v34  ;;  %v107_v39 = vld [vmem:[#allocation3 + $0x500] sm:$0xff]  ;;  %v108_v41 = vld [vmem:[#allocation3 + $0x508] sm:$0xff]  ;;  %v5394_v43 = vcombine.low %v103_v31, %v105_v32  ;;  %v443_v15 = vld [vmem:[#allocation3 + $0x290] sm:$0xff] }
  0x54   :  { %v109_v40 = vld [vmem:[#allocation3 + $0x580] sm:$0xff]  ;;  %v110_v42 = vld [vmem:[#allocation3 + $0x588] sm:$0xff]  ;;  %v5396_v44 = vcombine.low %v104_v33, %v106_v34  ;;  %v442_v18 = vld [vmem:[#allocation3 + $0x218] sm:$0xff]  ;;  %v5414_v21 = vcombine.low %v437_v5, %v439_v6  ;;  %v5419_v25 = vcombine.high %v441_v14, %v443_v15 }
  0x55   :  { %v5399_v45 = vcombine.high %v107_v39, %v109_v40  ;;  %v5401_v46 = vcombine.high %v108_v41, %v110_v42  ;;  %v111_v47 = vld [vmem:[#allocation3 + $0x600] sm:$0xff]  ;;  %v112_v49 = vld [vmem:[#allocation3 + $0x608] sm:$0xff]  ;;  %v5398_v51 = vcombine.low %v107_v39, %v109_v40  ;;  %v5400_v54 = vcombine.low %v108_v41, %v110_v42  ;;  %v444_v19 = vld [vmem:[#allocation3 + $0x298] sm:$0xff] }
  0x56   :  { %284 = vmatpush1.bf16.msra.mxu0 %v5386_v27  ;;  %325 = vmatpush1.bf16.msra.mxu1 %v5388_v28  ;;  %v113_v48 = vld [vmem:[#allocation3 + $0x680] sm:$0xff]  ;;  %v114_v50 = vld [vmem:[#allocation3 + $0x688] sm:$0xff]  ;;  %v445_v22 = vld [vmem:[#allocation3 + $0x310] sm:$0xff]  ;;  %v5421_v28 = vcombine.high %v442_v18, %v444_v19  ;;  %v5420_v32 = vcombine.low %v442_v18, %v444_v19 }
  0x57   :  { %285 = vmatprep.subr.bf16.mxu0 %v5391_v29  ;;  %326 = vmatprep.subr.bf16.mxu1 %v5393_v30  ;;  %v115_v52 = vld [vmem:[#allocation3 + $0x700] sm:$0xff]  ;;  %v5403_v55 = vcombine.high %v111_v47, %v113_v48  ;;  %v116_v56 = vld [vmem:[#allocation3 + $0x708] sm:$0xff]  ;;  %v5405_v58 = vcombine.high %v112_v49, %v114_v50  ;;  %v5402_v59 = vcombine.low %v111_v47, %v113_v48  ;;  %v447_v23 = vld [vmem:[#allocation3 + $0x390] sm:$0xff] }
  0x58   :  { %v117_v53 = vld [vmem:[#allocation3 + $0x780] sm:$0xff]  ;;  %v118_v57 = vld [vmem:[#allocation3 + $0x788] sm:$0xff]  ;;  %v5404_v62 = vcombine.low %v112_v49, %v114_v50  ;;  %v446_v26 = vld [vmem:[#allocation3 + $0x318] sm:$0xff]  ;;  %v5418_v29 = vcombine.low %v441_v14, %v443_v15  ;;  %v5423_v33 = vcombine.high %v445_v22, %v447_v23 }
  0x59   :  { %v5407_v63 = vcombine.high %v115_v52, %v117_v53  ;;  %v5409_v3 = vcombine.high %v116_v56, %v118_v57  ;;  %v5406_v4 = vcombine.low %v115_v52, %v117_v53  ;;  %v5408_v7 = vcombine.low %v116_v56, %v118_v57  ;;  %v6813_v11 = vld [vmem:[%s6900_s0] sm:$0xf]  ;;  %v448_v27 = vld [vmem:[#allocation3 + $0x398] sm:$0xff]  ;;  %v449_v30 = vld [vmem:[#allocation3 + $0x410] sm:$0xff] }
  0x5a   :  { %286 = vmatpush1.bf16.msra.mxu0 %v5390_v35  ;;  %327 = vmatpush1.bf16.msra.mxu1 %v5392_v36  ;;  %v451_v31 = vld [vmem:[#allocation3 + $0x490] sm:$0xff]  ;;  %v450_v34 = vld [vmem:[#allocation3 + $0x418] sm:$0xff]  ;;  %v5425_v36 = vcombine.high %v446_v26, %v448_v27  ;;  %v5424_v40 = vcombine.low %v446_v26, %v448_v27  ;;  %v6308_v5 = vld [vmem:[#allocation5 + $0x1c0] sm:$0xff]  }
  0x5b   :  { %287 = vmatprep.subr.bf16.mxu0 %v5395_v37  ;;  %328 = vmatprep.subr.bf16.mxu1 %v5397_v38  ;;  %v452_v35 = vld [vmem:[#allocation3 + $0x498] sm:$0xff]  ;;  %v5422_v37 = vcombine.low %v445_v22, %v447_v23  ;;  %v453_v38 = vld [vmem:[#allocation3 + $0x510] sm:$0xff]  ;;  %v5427_v41 = vcombine.high %v449_v30, %v451_v31  ;;  %v6309_v6 = vld [vmem:[#allocation5 + $0x100] sm:$0xff]  }
  0x5c   :  { %v455_v39 = vld [vmem:[#allocation3 + $0x590] sm:$0xff]  ;;  %v454_v42 = vld [vmem:[#allocation3 + $0x518] sm:$0xff]  ;;  %v5428_v48 = vcombine.low %v450_v34, %v452_v35  ;;  %v6312_v9 = vld [vmem:[#allocation5 + $0x1c8] sm:$0xff]  }
  0x5d   :  { %v459_v47 = vld [vmem:[#allocation3 + $0x690] sm:$0xff]  ;;  %v5431_v49 = vcombine.high %v453_v38, %v455_v39  ;;  %v458_v50 = vld [vmem:[#allocation3 + $0x618] sm:$0xff]  ;;  %v5430_v53 = vcombine.low %v453_v38, %v455_v39  ;;  %v6313_v10 = vld [vmem:[#allocation5 + $0x108] sm:$0xff]  }
  0x5e   :  { %288 = vmatpush1.bf16.msra.mxu0 %v5394_v43  ;;  %329 = vmatpush1.bf16.msra.mxu1 %v5396_v44  ;;  %v456_v43 = vld [vmem:[#allocation3 + $0x598] sm:$0xff]  ;;  %v5429_v44 = vcombine.high %v450_v34, %v452_v35  ;;  %v6316_v14 = vld [vmem:[#allocation5 + $0x1d0] sm:$0xff]   ;;  %v6325_v22 = vld [vmem:[#allocation5 + $0x120] sm:$0xff]  }
  0x5f   :  { %289 = vmatprep.subr.bf16.mxu0 %v5399_v45  ;;  %330 = vmatprep.subr.bf16.mxu1 %v5401_v46  ;;  %v5426_v45 = vcombine.low %v449_v30, %v451_v31  ;;  %v457_v46 = vld [vmem:[#allocation3 + $0x610] sm:$0xff]  ;;  %v5433_v52 = vcombine.high %v454_v42, %v456_v43  ;;  %v5432_v56 = vcombine.low %v454_v42, %v456_v43  ;;  %v6321_v18 = vld [vmem:[#allocation5 + $0x118] sm:$0xff]   ;;  %v6326_v23 = vld [vmem:[#allocation5 + $0x1a0] sm:$0xff]  }
  0x60   :  { %v5435_v57 = vcombine.high %v457_v46, %v459_v47  ;;  %v5434_v61 = vcombine.low %v457_v46, %v459_v47  ;;  %v6317_v15 = vld [vmem:[#allocation5 + $0x110] sm:$0xff]   ;;  %v6322_v19 = vld [vmem:[#allocation5 + $0x198] sm:$0xff]   ;;  %v6329_v26 = vld [vmem:[#allocation5 + $0x128] sm:$0xff]  }
  0x61   :  { %v6330_v27 = vld [vmem:[#allocation5 + $0x1a8] sm:$0xff]   ;;  %v6333_v30 = vld [vmem:[#allocation5 + $0x130] sm:$0xff]   ;;  %v6337_v34 = vld [vmem:[#allocation5 + $0x138] sm:$0xff]  }
  0x62   :  { %290 = vmatpush1.bf16.msra.mxu0 %v5398_v51  ;;  %331 = vmatpush1.bf16.msra.mxu1 %v5400_v54  ;;  %v460_v51 = vld [vmem:[#allocation3 + $0x698] sm:$0xff]  ;;  %v461_v54 = vld [vmem:[#allocation3 + $0x710] sm:$0xff] }
  0x63   :  { %291 = vmatprep.subr.bf16.mxu0 %v5403_v55  ;;  %332 = vmatprep.subr.bf16.mxu1 %v5405_v58  ;;  %v463_v55 = vld [vmem:[#allocation3 + $0x790] sm:$0xff]  ;;  %v462_v58 = vld [vmem:[#allocation3 + $0x718] sm:$0xff]  ;;  %v5437_v60 = vcombine.high %v458_v50, %v460_v51 }
  0x64   :  { %v5438_v2 = vcombine.low %v461_v54, %v463_v55  ;;  %v6334_v31 = vld [vmem:[#allocation5 + $0x1b0] sm:$0xff]   ;;  %v6338_v35 = vld [vmem:[#allocation5 + $0x1b8] sm:$0xff]  }
  0x66   :  { %292 = vmatpush1.bf16.msra.mxu0 %v5402_v59  ;;  %333 = vmatpush1.bf16.msra.mxu1 %v5404_v62  ;;  %v464_v59 = vld [vmem:[#allocation3 + $0x798] sm:$0xff]  ;;  %v5436_v62 = vcombine.low %v458_v50, %v460_v51 }
  0x67   :  { %293 = vmatprep.subr.bf16.mxu0 %v5407_v63  ;;  %334 = vmatprep.subr.bf16.mxu1 %v5409_v3  ;;  %v5439_v63 = vcombine.high %v461_v54, %v463_v55  ;;  %v5441_v1 = vcombine.high %v462_v58, %v464_v59  ;;  %v5440_v3 = vcombine.low %v462_v58, %v464_v59 }
  0x6a   :  { %294 = vmatpush1.bf16.msra.mxu0 %v5406_v4  ;;  %335 = vmatpush1.bf16.msra.mxu1 %v5408_v7  ;;  %v6307_v4 = vld [vmem:[#allocation5 + $0x140] sm:$0xff]  }
  0x6b   :  { %625 = vmatprep.subr.bf16.mxu0 %v5411_v8  ;;  %666 = vmatprep.subr.bf16.mxu1 %v5413_v12  ;;  %v6310_v7 = vld [vmem:[#allocation5 + $0x180] sm:$0xff]   ;;  %v6311_v8 = vld [vmem:[#allocation5 + $0x148] sm:$0xff]  }
  0x6c   :  { %v6314_v12 = vld [vmem:[#allocation5 + $0x188] sm:$0xff]  }
  0x6d   :  { %312 = vmatmul.mubr.bf16.vlgmr.msra.gmra.mrb[0].mxu0 %v6813_v11  ;;  %353 = vmatmul.mubr.bf16.vlgmr.msra.gmra.mrb[0].mxu1 %v6813_v11 }
  0x6e   :  { %626 = vmatpush1.bf16.msra.mxu0 %v5410_v13  ;;  %667 = vmatpush1.bf16.msra.mxu1 %v5412_v16  ;;  %v6315_v13 = vld [vmem:[#allocation5 + $0x150] sm:$0xff]   ;;  %v6319_v16 = vld [vmem:[#allocation5 + $0x158] sm:$0xff]  }
  0x6f   :  { %627 = vmatprep.subr.bf16.mxu0 %v5415_v17  ;;  %668 = vmatprep.subr.bf16.mxu1 %v5417_v20  ;;  %v6320_v17 = vld [vmem:[#allocation5 + $0x1d8] sm:$0xff]   ;;  %v6323_v20 = vld [vmem:[#allocation5 + $0x160] sm:$0xff]  }
  0x70   :  { %657 = vmatprep.mubr.bf16.mxu0 %v6708_v0  ;;  %698 = vmatprep.mubr.bf16.mxu1 %v6708_v0 }
  0x72   :  { %628 = vmatpush1.bf16.msra.mxu0 %v5414_v21  ;;  %669 = vmatpush1.bf16.msra.mxu1 %v5416_v24  ;;  %v6324_v21 = vld [vmem:[#allocation5 + $0x1e0] sm:$0xff]   ;;  %v6327_v24 = vld [vmem:[#allocation5 + $0x168] sm:$0xff]  }
  0x73   :  { %629 = vmatprep.subr.bf16.mxu0 %v5419_v25  ;;  %670 = vmatprep.subr.bf16.mxu1 %v5421_v28  ;;  %v6328_v25 = vld [vmem:[#allocation5 + $0x1e8] sm:$0xff]   ;;  %v6331_v28 = vld [vmem:[#allocation5 + $0x170] sm:$0xff]  }
  0x76   :  { %630 = vmatpush1.bf16.msra.mxu0 %v5418_v29  ;;  %671 = vmatpush1.bf16.msra.mxu1 %v5420_v32  ;;  %v6332_v29 = vld [vmem:[#allocation5 + $0x1f0] sm:$0xff]   ;;  %v6335_v32 = vld [vmem:[#allocation5 + $0x178] sm:$0xff]  }
  0x77   :  { %631 = vmatprep.subr.bf16.mxu0 %v5423_v33  ;;  %672 = vmatprep.subr.bf16.mxu1 %v5425_v36  ;;  %v6336_v33 = vld [vmem:[#allocation5 + $0x1f8] sm:$0xff]   ;;  %v6339_v36 = vld [vmem:[#allocation5 + $0x40] sm:$0xff]  }
  0x7a   :  { %632 = vmatpush1.bf16.msra.mxu0 %v5422_v37  ;;  %673 = vmatpush1.bf16.msra.mxu1 %v5424_v40  ;;  %v6340_v37 = vld [vmem:[#allocation5 + $0xc0] sm:$0xff]  }
  0x7b   :  { %633 = vmatprep.subr.bf16.mxu0 %v5427_v41  ;;  %674 = vmatprep.subr.bf16.mxu1 %v5429_v44 }
  0x7e   :  { %634 = vmatpush1.bf16.msra.mxu0 %v5426_v45  ;;  %675 = vmatpush1.bf16.msra.mxu1 %v5428_v48 }
  0x7f   :  { %635 = vmatprep.subr.bf16.mxu0 %v5431_v49  ;;  %676 = vmatprep.subr.bf16.mxu1 %v5433_v52 }
  0x82   :  { %636 = vmatpush1.bf16.msra.mxu0 %v5430_v53  ;;  %677 = vmatpush1.bf16.msra.mxu1 %v5432_v56 }
  0x83   :  { %637 = vmatprep.subr.bf16.mxu0 %v5435_v57  ;;  %678 = vmatprep.subr.bf16.mxu1 %v5437_v60 }
  0x86   :  { %638 = vmatpush1.bf16.msra.mxu0 %v5434_v61  ;;  %679 = vmatpush1.bf16.msra.mxu1 %v5436_v62  ;;  %v6341_v61 = vld [vmem:[#allocation5] sm:$0xff]  }
  0x87   :  { %639 = vmatprep.subr.bf16.mxu0 %v5439_v63  ;;  %680 = vmatprep.subr.bf16.mxu1 %v5441_v1  ;;  %v6342_v1 = vld [vmem:[#allocation5 + $0x80] sm:$0xff]  }
  0x8a   :  { %640 = vmatpush1.bf16.msra.mxu0 %v5438_v2  ;;  %681 = vmatpush1.bf16.msra.mxu1 %v5440_v3  ;;  %v6343_v3 = vld [vmem:[#allocation5 + $0x48] sm:$0xff]  }
  0x8b   :  { %5923 = vmatprep.subr.bf16.mxu0 %v6307_v4  ;;  %5945 = vmatprep.subr.bf16.mxu1 %v6308_v5  ;;  %v6344_v5 = vld [vmem:[#allocation5 + $0xc8] sm:$0xff]  }
  0x8d   :  { %658 = vmatmul.mubr.bf16.vlgmr.msra.gmra.mrb[4].mxu0 %v6813_v11  ;;  %699 = vmatmul.mubr.bf16.vlgmr.msra.gmra.mrb[4].mxu1 %v6813_v11  ;;  %v6318_v11 = vld [vmem:[#allocation5 + $0x190] sm:$0xff]  }
  0x8e   :  { %5924 = vmatpush3.bf16.msra.mxu0 %v6309_v6  ;;  %5946 = vmatpush3.bf16.msra.mxu1 %v6310_v7  ;;  %v6345_v7 = vld [vmem:[#allocation5 + $0x8] sm:$0xff]  }
  0x8f   :  { %5925 = vmatprep.subr.bf16.mxu0 %v6311_v8  ;;  %5947 = vmatprep.subr.bf16.mxu1 %v6312_v9  ;;  %v6346_v8 = vld [vmem:[#allocation5 + $0x88] sm:$0xff]   ;;  %v6347_v9 = vld [vmem:[#allocation5 + $0x50] sm:$0xff]  }
  0x92   :  { %5926 = vmatpush3.bf16.msra.mxu0 %v6313_v10  ;;  %5948 = vmatpush3.bf16.msra.mxu1 %v6314_v12  ;;  %v6348_v10 = vld [vmem:[#allocation5 + $0xd0] sm:$0xff]  }
  0x93   :  { %5927 = vmatprep.subr.bf16.mxu0 %v6315_v13  ;;  %5949 = vmatprep.subr.bf16.mxu1 %v6316_v14  ;;  %v6349_v12 = vld [vmem:[#allocation5 + $0x10] sm:$0xff]   ;;  %v6351_v14 = vld [vmem:[#allocation5 + $0x58] sm:$0xff]  }
  0x94   :  { %v6350_v13 = vld [vmem:[#allocation5 + $0x90] sm:$0xff]  }
  0x96   :  { %5928 = vmatpush3.bf16.msra.mxu0 %v6317_v15  ;;  %5950 = vmatpush3.bf16.msra.mxu1 %v6318_v11  ;;  %v6352_v15 = vld [vmem:[#allocation5 + $0xd8] sm:$0xff]  }
  0x97   :  { %5929 = vmatprep.subr.bf16.mxu0 %v6319_v16  ;;  %5951 = vmatprep.subr.bf16.mxu1 %v6320_v17  ;;  %v6353_v11 = vld [vmem:[#allocation5 + $0x18] sm:$0xff]   ;;  %v6355_v17 = vld [vmem:[#allocation5 + $0x60] sm:$0xff]  }
  0x98   :  { %v6354_v16 = vld [vmem:[#allocation5 + $0x98] sm:$0xff]  }
  0x9a   :  { %5930 = vmatpush3.bf16.msra.mxu0 %v6321_v18  ;;  %5952 = vmatpush3.bf16.msra.mxu1 %v6322_v19  ;;  %v6356_v18 = vld [vmem:[#allocation5 + $0xe0] sm:$0xff]  }
  0x9b   :  { %5931 = vmatprep.subr.bf16.mxu0 %v6323_v20  ;;  %5953 = vmatprep.subr.bf16.mxu1 %v6324_v21  ;;  %v6357_v19 = vld [vmem:[#allocation5 + $0x20] sm:$0xff]   ;;  %v6359_v21 = vld [vmem:[#allocation5 + $0x68] sm:$0xff]  }
  0x9c   :  { %v6358_v20 = vld [vmem:[#allocation5 + $0xa0] sm:$0xff]  }
  0x9e   :  { %5932 = vmatpush3.bf16.msra.mxu0 %v6325_v22  ;;  %5954 = vmatpush3.bf16.msra.mxu1 %v6326_v23  ;;  %v6360_v22 = vld [vmem:[#allocation5 + $0xe8] sm:$0xff]  }
  0x9f   :  { %5933 = vmatprep.subr.bf16.mxu0 %v6327_v24  ;;  %5955 = vmatprep.subr.bf16.mxu1 %v6328_v25  ;;  %v6361_v23 = vld [vmem:[#allocation5 + $0x28] sm:$0xff]   ;;  %v6363_v25 = vld [vmem:[#allocation5 + $0x70] sm:$0xff]  }
  0xa0   :  { %v6362_v24 = vld [vmem:[#allocation5 + $0xa8] sm:$0xff]  }
  0xa2   :  { %5934 = vmatpush3.bf16.msra.mxu0 %v6329_v26  ;;  %5956 = vmatpush3.bf16.msra.mxu1 %v6330_v27  ;;  %v6364_v26 = vld [vmem:[#allocation5 + $0xf0] sm:$0xff]  }
  0xa3   :  { %5935 = vmatprep.subr.bf16.mxu0 %v6331_v28  ;;  %5957 = vmatprep.subr.bf16.mxu1 %v6332_v29  ;;  %v6365_v27 = vld [vmem:[#allocation5 + $0x30] sm:$0xff]   ;;  %v6367_v29 = vld [vmem:[#allocation5 + $0x78] sm:$0xff]  }
  0xa4   :  { %v6366_v28 = vld [vmem:[#allocation5 + $0xb0] sm:$0xff]  }
  0xa6   :  { %5936 = vmatpush3.bf16.msra.mxu0 %v6333_v30  ;;  %5958 = vmatpush3.bf16.msra.mxu1 %v6334_v31  ;;  %v6368_v30 = vld [vmem:[#allocation5 + $0xf8] sm:$0xff]   ;;  %v1323_v31 = vld [vmem:[#allocation3 + $0x20] sm:$0xff] }
  0xa7   :  { %5937 = vmatprep.subr.bf16.mxu0 %v6335_v32  ;;  %5959 = vmatprep.subr.bf16.mxu1 %v6336_v33  ;;  %v1325_v32 = vld [vmem:[#allocation3 + $0xa0] sm:$0xff]  ;;  %v1324_v33 = vld [vmem:[#allocation3 + $0x28] sm:$0xff] }
  0xaa   :  { %5938 = vmatpush3.bf16.msra.mxu0 %v6337_v34  ;;  %5960 = vmatpush3.bf16.msra.mxu1 %v6338_v35  ;;  %v1326_v34 = vld [vmem:[#allocation3 + $0xa8] sm:$0xff]  ;;  %v6369_v35 = vld [vmem:[#allocation5 + $0x38] sm:$0xff]  }
  0xab   :  { %5967 = vmatprep.subr.bf16.mxu0 %v6339_v36  ;;  %5989 = vmatprep.subr.bf16.mxu1 %v6340_v37  ;;  %v6370_v37 = vld [vmem:[#allocation5 + $0xb8] sm:$0xff]  }
 0x140   :  { %v6821_v38 = vpop.f32.mrb[0].mxu0  ;;  %v6823_v39 = vpop.f32.mrb[0].mxu1 }
 0x141   :  { %v315_v40 = vpop.f32.mrb[1].mxu0  ;;  %v356_v41 = vpop.f32.mrb[1].mxu1  ;;  %v361_v36 = vmax.f32 %v6821_v38, 0.0 }
 0x142   :  { %v317_v42 = vpop.f32.mrb[2].mxu0  ;;  %v358_v43 = vpop.f32.mrb[2].mxu1  ;;  %v362_v54 = vmax.f32 %v315_v40, 0.0  ;;  %v364_v58 = vmax.f32 %v356_v41, 0.0  ;;  %v5507_v40 = vcombine.high %v1323_v31, %v1325_v32  ;;  %v363_v41 = vmax.f32 %v6823_v39, 0.0  ;;  %v1332_v39 = vld [vmem:[#allocation3 + $0x228] sm:$0xff] }
 0x143   :  { %v318_v44 = vpop.f32.mrb[3].mxu0  ;;  %v359_v45 = vpop.f32.mrb[3].mxu1  ;;  %v5509_v42 = vcombine.high %v1324_v33, %v1326_v34  ;;  %v1327_v43 = vld [vmem:[#allocation3 + $0x120] sm:$0xff] }
 0x144   :  { %v366_v4 = vpack.c.bf16 %v362_v54, %v362_v54  ;;  %v368_v6 = vpack.c.bf16 %v364_v58, %v364_v58  ;;  %v1329_v44 = vld [vmem:[#allocation3 + $0x1a0] sm:$0xff]  ;;  %v1328_v45 = vld [vmem:[#allocation3 + $0x128] sm:$0xff]  ;;  %v367_v38 = vpack.c.bf16 %v363_v41, %v363_v41 }
 0x145   :  { %v1334_v54 = vld [vmem:[#allocation3 + $0x2a8] sm:$0xff]  ;;  %v6371_v41 = vld [vmem:[#allocation5 + $0x240] sm:$0xff]  }
 0x146   :  { %v5517_v58 = vcombine.high %v1332_v39, %v1334_v54 }
 0x160   :  { %v659_v46 = vpop.f32.mrb[4].mxu0  ;;  %v700_v48 = vpop.f32.mrb[4].mxu1 }
 0x161   :  { %v707_v47 = vmax.f32 %v659_v46, 0.0  ;;  %v661_v49 = vpop.f32.mrb[5].mxu0  ;;  %v709_v50 = vmax.f32 %v700_v48, 0.0  ;;  %v702_v52 = vpop.f32.mrb[5].mxu1  ;;  %v1330_v46 = vld [vmem:[#allocation3 + $0x1a8] sm:$0xff]  ;;  %v365_v48 = vpack.c.bf16 %v361_v36, %v361_v36 }
 0x162   :  { %v708_v51 = vmax.f32 %v661_v49, 0.0  ;;  %v663_v53 = vpop.f32.mrb[6].mxu0  ;;  %v710_v55 = vmax.f32 %v702_v52, 0.0  ;;  %v704_v56 = vpop.f32.mrb[6].mxu1  ;;  %v5508_v49 = vcombine.low %v1324_v33, %v1326_v34  ;;  %v1331_v52 = vld [vmem:[#allocation3 + $0x220] sm:$0xff] }
 0x163   :  { %v664_v57 = vpop.f32.mrb[7].mxu0  ;;  %v705_v60 = vpop.f32.mrb[7].mxu1  ;;  %v711_v62 = vpack.c.bf16 %v707_v47, %v707_v47  ;;  %v713_v2 = vpack.c.bf16 %v709_v50, %v709_v50  ;;  %v5506_v47 = vcombine.low %v1323_v31, %v1325_v32  ;;  %v5511_v50 = vcombine.high %v1327_v43, %v1329_v44  ;;  %v1333_v53 = vld [vmem:[#allocation3 + $0x2a0] sm:$0xff]  ;;  %v1354_v31 = vld [vmem:[#allocation3 + $0x7a8] sm:$0xff] }
 0x164   :  { %v712_v59 = vpack.c.bf16 %v708_v51, %v708_v51  ;;  %v714_v63 = vpack.c.bf16 %v710_v55, %v710_v55  ;;  %v5513_v51 = vcombine.high %v1328_v45, %v1330_v46  ;;  %v5510_v55 = vcombine.low %v1327_v43, %v1329_v44  ;;  %v1337_v60 = vld [vmem:[#allocation3 + $0x3a0] sm:$0xff] }
 0x165   :  { %v5512_v56 = vcombine.low %v1328_v45, %v1330_v46  ;;  %v5515_v57 = vcombine.high %v1331_v52, %v1333_v53  ;;  %v6373_v43 = vld [vmem:[#allocation5 + $0x200] sm:$0xff]   ;;  %v6375_v45 = vld [vmem:[#allocation5 + $0x248] sm:$0xff]  }
 0x166   :  { %1003 = vmatprep.mubr.bf16.mxu0 %v712_v59  ;;  %1043 = vmatprep.mubr.bf16.mxu1 %v714_v63  ;;  %v1335_v59 = vld [vmem:[#allocation3 + $0x320] sm:$0xff]  ;;  %v5514_v63 = vcombine.low %v1331_v52, %v1333_v53  ;;  %v6376_v46 = vld [vmem:[#allocation5 + $0x2c8] sm:$0xff]   ;;  %v6383_v52 = vld [vmem:[#allocation5 + $0x258] sm:$0xff]  }
 0x167   :  { %1004 = vmatmul.mubr.bf16.vlgmr.msra.gmra.mrb[8].mxu0 %v711_v62  ;;  %1044 = vmatmul.mubr.bf16.vlgmr.msra.gmra.mrb[8].mxu1 %v713_v2  ;;  %v1338_v62 = vld [vmem:[#allocation3 + $0x3a8] sm:$0xff]  ;;  %v5519_v2 = vcombine.high %v1335_v59, %v1337_v60  ;;  %v6374_v44 = vld [vmem:[#allocation5 + $0x280] sm:$0xff]   ;;  %v6384_v53 = vld [vmem:[#allocation5 + $0x2d8] sm:$0xff]  }
 0x168   :  { %5968 = vmatpush3.bf16.msra.mxu0 %v6341_v61  ;;  %5990 = vmatpush3.bf16.msra.mxu1 %v6342_v1  ;;  %v1336_v61 = vld [vmem:[#allocation3 + $0x328] sm:$0xff]  ;;  %v5516_v1 = vcombine.low %v1332_v39, %v1334_v54  ;;  %v6385_v39 = vld [vmem:[#allocation5 + $0x218] sm:$0xff]  }
 0x169   :  { %1275 = vmatprep.mubr.bf16.mxu0 %v366_v4  ;;  %1315 = vmatprep.mubr.bf16.mxu1 %v368_v6  ;;  %v1339_v4 = vld [vmem:[#allocation3 + $0x420] sm:$0xff]  ;;  %v1340_v6 = vld [vmem:[#allocation3 + $0x428] sm:$0xff]  ;;  %v6386_v54 = vld [vmem:[#allocation5 + $0x298] sm:$0xff]  }
 0x16a   :  { %5969 = vmatprep.subr.bf16.mxu0 %v6343_v3  ;;  %5991 = vmatprep.subr.bf16.mxu1 %v6344_v5  ;;  %v5521_v3 = vcombine.high %v1336_v61, %v1338_v62  ;;  %v1341_v5 = vld [vmem:[#allocation3 + $0x4a0] sm:$0xff] }
 0x16c   :  { %5970 = vmatpush3.bf16.msra.mxu0 %v6345_v7  ;;  %5992 = vmatpush3.bf16.msra.mxu1 %v6346_v8  ;;  %v1342_v7 = vld [vmem:[#allocation3 + $0x4a8] sm:$0xff]  ;;  %v5518_v8 = vcombine.low %v1335_v59, %v1337_v60 }
 0x16d   :  { %5971 = vmatprep.subr.bf16.mxu0 %v6347_v9  ;;  %5993 = vmatprep.subr.bf16.mxu1 %v6348_v10  ;;  %v5520_v9 = vcombine.low %v1336_v61, %v1338_v62  ;;  %v5523_v10 = vcombine.high %v1339_v4, %v1341_v5  ;;  %v6391_v59 = vld [vmem:[#allocation5 + $0x268] sm:$0xff]  }
 0x16e   :  { %v6392_v60 = vld [vmem:[#allocation5 + $0x2e8] sm:$0xff]  }
 0x16f   :  { %v6393_v61 = vld [vmem:[#allocation5 + $0x228] sm:$0xff]  }
 0x170   :  { %5972 = vmatpush3.bf16.msra.mxu0 %v6349_v12  ;;  %5994 = vmatpush3.bf16.msra.mxu1 %v6350_v13  ;;  %v5525_v12 = vcombine.high %v1340_v6, %v1342_v7  ;;  %v1343_v13 = vld [vmem:[#allocation3 + $0x520] sm:$0xff]  ;;  %v6394_v62 = vld [vmem:[#allocation5 + $0x2a8] sm:$0xff]  }
 0x171   :  { %5973 = vmatprep.subr.bf16.mxu0 %v6351_v14  ;;  %5995 = vmatprep.subr.bf16.mxu1 %v6352_v15  ;;  %v1345_v14 = vld [vmem:[#allocation3 + $0x5a0] sm:$0xff]  ;;  %v1344_v15 = vld [vmem:[#allocation3 + $0x528] sm:$0xff] }
 0x174   :  { %5974 = vmatpush3.bf16.msra.mxu0 %v6353_v11  ;;  %5996 = vmatpush3.bf16.msra.mxu1 %v6354_v16  ;;  %v1346_v11 = vld [vmem:[#allocation3 + $0x5a8] sm:$0xff]  ;;  %v5522_v16 = vcombine.low %v1339_v4, %v1341_v5  ;;  %v6399_v4 = vld [vmem:[#allocation5 + $0x278] sm:$0xff]  }
 0x175   :  { %5975 = vmatprep.subr.bf16.mxu0 %v6355_v17  ;;  %5997 = vmatprep.subr.bf16.mxu1 %v6356_v18  ;;  %v5524_v17 = vcombine.low %v1340_v6, %v1342_v7  ;;  %v5527_v18 = vcombine.high %v1343_v13, %v1345_v14  ;;  %v6400_v5 = vld [vmem:[#allocation5 + $0x2f8] sm:$0xff]  }
 0x176   :  { %v6401_v6 = vld [vmem:[#allocation5 + $0x238] sm:$0xff]  }
 0x177   :  { %v6402_v7 = vld [vmem:[#allocation5 + $0x2b8] sm:$0xff]  }
 0x178   :  { %5976 = vmatpush3.bf16.msra.mxu0 %v6357_v19  ;;  %5998 = vmatpush3.bf16.msra.mxu1 %v6358_v20  ;;  %v5529_v19 = vcombine.high %v1344_v15, %v1346_v11  ;;  %v1347_v20 = vld [vmem:[#allocation3 + $0x620] sm:$0xff] }
 0x179   :  { %5977 = vmatprep.subr.bf16.mxu0 %v6359_v21  ;;  %5999 = vmatprep.subr.bf16.mxu1 %v6360_v22  ;;  %v1349_v21 = vld [vmem:[#allocation3 + $0x6a0] sm:$0xff]  ;;  %v1348_v22 = vld [vmem:[#allocation3 + $0x628] sm:$0xff] }
 0x17a   :  { %v5530_v32 = vcombine.low %v1347_v20, %v1349_v21 }
 0x17c   :  { %5978 = vmatpush3.bf16.msra.mxu0 %v6361_v23  ;;  %6000 = vmatpush3.bf16.msra.mxu1 %v6362_v24  ;;  %v1350_v23 = vld [vmem:[#allocation3 + $0x6a8] sm:$0xff]  ;;  %v5526_v24 = vcombine.low %v1343_v13, %v1345_v14  ;;  %v1945_v13 = vld [vmem:[#allocation3 + $0xb8] sm:$0xff] }
 0x17d   :  { %5979 = vmatprep.subr.bf16.mxu0 %v6363_v25  ;;  %6001 = vmatprep.subr.bf16.mxu1 %v6364_v26  ;;  %v5528_v25 = vcombine.low %v1344_v15, %v1346_v11  ;;  %v5531_v26 = vcombine.high %v1347_v20, %v1349_v21  ;;  %v5532_v33 = vcombine.low %v1348_v22, %v1350_v23 }
 0x180   :  { %5980 = vmatpush3.bf16.msra.mxu0 %v6365_v27  ;;  %6002 = vmatpush3.bf16.msra.mxu1 %v6366_v28  ;;  %v5533_v27 = vcombine.high %v1348_v22, %v1350_v23  ;;  %v1351_v28 = vld [vmem:[#allocation3 + $0x720] sm:$0xff] }
 0x181   :  { %5981 = vmatprep.subr.bf16.mxu0 %v6367_v29  ;;  %6003 = vmatprep.subr.bf16.mxu1 %v6368_v30  ;;  %v1353_v29 = vld [vmem:[#allocation3 + $0x7a0] sm:$0xff]  ;;  %v1352_v30 = vld [vmem:[#allocation3 + $0x728] sm:$0xff] }
 0x182   :  { %v5535_v34 = vcombine.high %v1351_v28, %v1353_v29  ;;  %v5534_v36 = vcombine.low %v1351_v28, %v1353_v29 }
 0x184   :  { %5982 = vmatpush3.bf16.msra.mxu0 %v6369_v35  ;;  %6004 = vmatpush3.bf16.msra.mxu1 %v6370_v37  ;;  %v5537_v35 = vcombine.high %v1352_v30, %v1354_v31  ;;  %v5536_v37 = vcombine.low %v1352_v30, %v1354_v31 }
 0x185   :  { %1515 = vmatprep.subr.bf16.mxu0 %v5507_v40  ;;  %1556 = vmatprep.subr.bf16.mxu1 %v5509_v42  ;;  %v6832_v40 = vld [vmem:[%s6900_s0] sm:$0xf] }
 0x186   :  { %v6372_v42 = vld [vmem:[#allocation5 + $0x2c0] sm:$0xff]  }
 0x187   :  { %1276 = vmatmul.mubr.bf16.vlgmr.msra.gmra.mrb[12].mxu0 %v365_v48  ;;  %1316 = vmatmul.mubr.bf16.vlgmr.msra.gmra.mrb[12].mxu1 %v367_v38  ;;  %v6378_v48 = vld [vmem:[#allocation5 + $0x288] sm:$0xff]   ;;  %v6381_v38 = vld [vmem:[#allocation5 + $0x210] sm:$0xff]  }
 0x188   :  { %1516 = vmatpush1.bf16.msra.mxu0 %v5506_v47  ;;  %1557 = vmatpush1.bf16.msra.mxu1 %v5508_v49  ;;  %v6377_v47 = vld [vmem:[#allocation5 + $0x208] sm:$0xff]   ;;  %v6379_v49 = vld [vmem:[#allocation5 + $0x250] sm:$0xff]  }
 0x189   :  { %1517 = vmatprep.subr.bf16.mxu0 %v5511_v50  ;;  %1558 = vmatprep.subr.bf16.mxu1 %v5513_v51  ;;  %v6380_v50 = vld [vmem:[#allocation5 + $0x2d0] sm:$0xff]  }
 0x18a   :  { %1547 = vmatprep.mubr.bf16.mxu0 %v6708_v0  ;;  %1588 = vmatprep.mubr.bf16.mxu1 %v6708_v0  ;;  %v6382_v51 = vld [vmem:[#allocation5 + $0x290] sm:$0xff]  }
 0x18c   :  { %1518 = vmatpush1.bf16.msra.mxu0 %v5510_v55  ;;  %1559 = vmatpush1.bf16.msra.mxu1 %v5512_v56  ;;  %v6387_v55 = vld [vmem:[#allocation5 + $0x260] sm:$0xff]  }
 0x18d   :  { %1519 = vmatprep.subr.bf16.mxu0 %v5515_v57  ;;  %1560 = vmatprep.subr.bf16.mxu1 %v5517_v58  ;;  %v6388_v56 = vld [vmem:[#allocation5 + $0x2e0] sm:$0xff]  }
 0x18e   :  { %v6389_v57 = vld [vmem:[#allocation5 + $0x220] sm:$0xff]  }
 0x18f   :  { %v6390_v58 = vld [vmem:[#allocation5 + $0x2a0] sm:$0xff]  }
 0x190   :  { %1520 = vmatpush1.bf16.msra.mxu0 %v5514_v63  ;;  %1561 = vmatpush1.bf16.msra.mxu1 %v5516_v1  ;;  %v6395_v63 = vld [vmem:[#allocation5 + $0x270] sm:$0xff]  }
 0x191   :  { %1521 = vmatprep.subr.bf16.mxu0 %v5519_v2  ;;  %1562 = vmatprep.subr.bf16.mxu1 %v5521_v3  ;;  %v6396_v1 = vld [vmem:[#allocation5 + $0x2f0] sm:$0xff]  }
 0x192   :  { %v6397_v2 = vld [vmem:[#allocation5 + $0x230] sm:$0xff]  }
 0x193   :  { %v6398_v3 = vld [vmem:[#allocation5 + $0x2b0] sm:$0xff]  }
 0x194   :  { %1522 = vmatpush1.bf16.msra.mxu0 %v5518_v8  ;;  %1563 = vmatpush1.bf16.msra.mxu1 %v5520_v9  ;;  %v6836_v8 = vld [vmem:[#allocation3 + $0x30] sm:$0xff] }
 0x195   :  { %1523 = vmatprep.subr.bf16.mxu0 %v5523_v10  ;;  %1564 = vmatprep.subr.bf16.mxu1 %v5525_v12  ;;  %v1944_v9 = vld [vmem:[#allocation3 + $0xb0] sm:$0xff]  ;;  %v6838_v10 = vld [vmem:[#allocation3 + $0x38] sm:$0xff] }
 0x196   :  { %v5571_v12 = vcombine.high %v6836_v8, %v1944_v9  ;;  %v5570_v14 = vcombine.low %v6836_v8, %v1944_v9  ;;  %v5572_v15 = vcombine.low %v6838_v10, %v1945_v13  ;;  %v5573_v11 = vcombine.high %v6838_v10, %v1945_v13  ;;  %v1956_v8 = vld [vmem:[#allocation3 + $0x3b0] sm:$0xff]  ;;  %v1955_v9 = vld [vmem:[#allocation3 + $0x338] sm:$0xff] }
 0x197   :  { %v1957_v10 = vld [vmem:[#allocation3 + $0x3b8] sm:$0xff] }
 0x198   :  { %1524 = vmatpush1.bf16.msra.mxu0 %v5522_v16  ;;  %1565 = vmatpush1.bf16.msra.mxu1 %v5524_v17 }
 0x199   :  { %1525 = vmatprep.subr.bf16.mxu0 %v5527_v18  ;;  %1566 = vmatprep.subr.bf16.mxu1 %v5529_v19 }
 0x19c   :  { %1526 = vmatpush1.bf16.msra.mxu0 %v5526_v24  ;;  %1567 = vmatpush1.bf16.msra.mxu1 %v5528_v25 }
 0x19d   :  { %1527 = vmatprep.subr.bf16.mxu0 %v5531_v26  ;;  %1568 = vmatprep.subr.bf16.mxu1 %v5533_v27 }
 0x1a0   :  { %1528 = vmatpush1.bf16.msra.mxu0 %v5530_v32  ;;  %1569 = vmatpush1.bf16.msra.mxu1 %v5532_v33 }
 0x1a1   :  { %1529 = vmatprep.subr.bf16.mxu0 %v5535_v34  ;;  %1570 = vmatprep.subr.bf16.mxu1 %v5537_v35 }
 0x1a4   :  { %1530 = vmatpush1.bf16.msra.mxu0 %v5534_v36  ;;  %1571 = vmatpush1.bf16.msra.mxu1 %v5536_v37 }
 0x1a5   :  { %6011 = vmatprep.subr.bf16.mxu0 %v6371_v41  ;;  %6033 = vmatprep.subr.bf16.mxu1 %v6372_v42 }
 0x1a7   :  { %1548 = vmatmul.mubr.bf16.vlgmr.msra.gmra.mrb[16].mxu0 %v6832_v40  ;;  %1589 = vmatmul.mubr.bf16.vlgmr.msra.gmra.mrb[16].mxu1 %v6832_v40 }
 0x1a8   :  { %6012 = vmatpush3.bf16.msra.mxu0 %v6373_v43  ;;  %6034 = vmatpush3.bf16.msra.mxu1 %v6374_v44 }
 0x1a9   :  { %6013 = vmatprep.subr.bf16.mxu0 %v6375_v45  ;;  %6035 = vmatprep.subr.bf16.mxu1 %v6376_v46 }
 0x1ac   :  { %6014 = vmatpush3.bf16.msra.mxu0 %v6377_v47  ;;  %6036 = vmatpush3.bf16.msra.mxu1 %v6378_v48 }
 0x1ad   :  { %6015 = vmatprep.subr.bf16.mxu0 %v6379_v49  ;;  %6037 = vmatprep.subr.bf16.mxu1 %v6380_v50  ;;  %v1946_v50 = vld [vmem:[#allocation3 + $0x130] sm:$0xff] }
 0x1b0   :  { %6016 = vmatpush3.bf16.msra.mxu0 %v6381_v38  ;;  %6038 = vmatpush3.bf16.msra.mxu1 %v6382_v51  ;;  %v1948_v38 = vld [vmem:[#allocation3 + $0x1b0] sm:$0xff] }
 0x1b1   :  { %6017 = vmatprep.subr.bf16.mxu0 %v6383_v52  ;;  %6039 = vmatprep.subr.bf16.mxu1 %v6384_v53 }
 0x1b4   :  { %6018 = vmatpush3.bf16.msra.mxu0 %v6385_v39  ;;  %6040 = vmatpush3.bf16.msra.mxu1 %v6386_v54  ;;  %v1947_v39 = vld [vmem:[#allocation3 + $0x138] sm:$0xff] }
 0x1b5   :  { %6019 = vmatprep.subr.bf16.mxu0 %v6387_v55  ;;  %6041 = vmatprep.subr.bf16.mxu1 %v6388_v56  ;;  %v1949_v54 = vld [vmem:[#allocation3 + $0x1b8] sm:$0xff] }
 0x1b8   :  { %6020 = vmatpush3.bf16.msra.mxu0 %v6389_v57  ;;  %6042 = vmatpush3.bf16.msra.mxu1 %v6390_v58 }
 0x1b9   :  { %6021 = vmatprep.subr.bf16.mxu0 %v6391_v59  ;;  %6043 = vmatprep.subr.bf16.mxu1 %v6392_v60  ;;  %v5575_v59 = vcombine.high %v1946_v50, %v1948_v38 }
 0x1bc   :  { %6022 = vmatpush3.bf16.msra.mxu0 %v6393_v61  ;;  %6044 = vmatpush3.bf16.msra.mxu1 %v6394_v62  ;;  %v5577_v61 = vcombine.high %v1947_v39, %v1949_v54  ;;  %v1950_v62 = vld [vmem:[#allocation3 + $0x230] sm:$0xff] }
 0x1bd   :  { %6023 = vmatprep.subr.bf16.mxu0 %v6395_v63  ;;  %6045 = vmatprep.subr.bf16.mxu1 %v6396_v1  ;;  %v1952_v63 = vld [vmem:[#allocation3 + $0x2b0] sm:$0xff]  ;;  %v1951_v1 = vld [vmem:[#allocation3 + $0x238] sm:$0xff] }
 0x1c0   :  { %6024 = vmatpush3.bf16.msra.mxu0 %v6397_v2  ;;  %6046 = vmatpush3.bf16.msra.mxu1 %v6398_v3  ;;  %v1953_v2 = vld [vmem:[#allocation3 + $0x2b8] sm:$0xff]  ;;  %v5574_v3 = vcombine.low %v1946_v50, %v1948_v38 }
 0x1c1   :  { %6025 = vmatprep.subr.bf16.mxu0 %v6399_v4  ;;  %6047 = vmatprep.subr.bf16.mxu1 %v6400_v5  ;;  %v5576_v4 = vcombine.low %v1947_v39, %v1949_v54  ;;  %v5579_v5 = vcombine.high %v1950_v62, %v1952_v63  ;;  %v5580_v13 = vcombine.low %v1951_v1, %v1953_v2  ;;  %v6405_v39 = vld [vmem:[#allocation5 + $0x300] sm:$0xff]  }
 0x1c2   :  { %v6406_v54 = vld [vmem:[#allocation5 + $0x380] sm:$0xff]  }
 0x1c4   :  { %6026 = vmatpush3.bf16.msra.mxu0 %v6401_v6  ;;  %6048 = vmatpush3.bf16.msra.mxu1 %v6402_v7  ;;  %v5581_v6 = vcombine.high %v1951_v1, %v1953_v2  ;;  %v1954_v7 = vld [vmem:[#allocation3 + $0x330] sm:$0xff]  ;;  %v6416_v1 = vld [vmem:[#allocation5 + $0x3d8] sm:$0xff]  }
 0x1c5   :  { %2134 = vmatprep.subr.bf16.mxu0 %v5571_v12  ;;  %2175 = vmatprep.subr.bf16.mxu1 %v5573_v11  ;;  %v5578_v12 = vcombine.low %v1950_v62, %v1952_v63  ;;  %v1958_v11 = vld [vmem:[#allocation3 + $0x430] sm:$0xff]  ;;  %v6415_v63 = vld [vmem:[#allocation5 + $0x358] sm:$0xff]  }
 0x1c6   :  { %v6414_v62 = vld [vmem:[#allocation5 + $0x390] sm:$0xff]   ;;  %v6417_v2 = vld [vmem:[#allocation5 + $0x318] sm:$0xff]  }
 0x23a   :  { %v5939_v16 = vpop.f32.mrb[8].mxu0  ;;  %v5961_v17 = vpop.f32.mrb[8].mxu1 }
 0x23b   :  { %v5940_v18 = vpop.f32.mrb[9].mxu0  ;;  %v5962_v20 = vpop.f32.mrb[9].mxu1 }
 0x23c   :  { %v5941_v19 = vadd.f32 %v5940_v18, %v5939_v16  ;;  %v5942_v21 = vpop.f32.mrb[10].mxu0  ;;  %v5963_v22 = vadd.f32 %v5962_v20, %v5961_v17  ;;  %v5964_v23 = vpop.f32.mrb[10].mxu1  ;;  %v1960_v16 = vld [vmem:[#allocation3 + $0x4b0] sm:$0xff]  ;;  %v1959_v17 = vld [vmem:[#allocation3 + $0x438] sm:$0xff]  ;;  %v5584_v20 = vcombine.low %v1955_v9, %v1957_v10 }
 0x23d   :  { %v5943_v24 = vpop.f32.mrb[11].mxu0  ;;  %v5965_v25 = vpop.f32.mrb[11].mxu1  ;;  %v1961_v18 = vld [vmem:[#allocation3 + $0x4b8] sm:$0xff]  ;;  %v5587_v21 = vcombine.high %v1958_v11, %v1960_v16  ;;  %v1962_v23 = vld [vmem:[#allocation3 + $0x530] sm:$0xff] }
 0x23e   :  { %v1046_v26 = vadd.f32 %v5963_v22, %v5941_v19  ;;  %v5582_v19 = vcombine.low %v1954_v7, %v1956_v8  ;;  %v5589_v22 = vcombine.high %v1959_v17, %v1961_v18  ;;  %v1964_v24 = vld [vmem:[#allocation3 + $0x5b0] sm:$0xff]  ;;  %v1963_v25 = vld [vmem:[#allocation3 + $0x538] sm:$0xff] }
 0x25a   :  { %v5983_v27 = vpop.f32.mrb[12].mxu0  ;;  %v6005_v28 = vpop.f32.mrb[12].mxu1 }
 0x25b   :  { %v5984_v29 = vpop.f32.mrb[13].mxu0  ;;  %v6006_v31 = vpop.f32.mrb[13].mxu1 }
 0x25c   :  { %v5985_v30 = vadd.f32 %v5984_v29, %v5983_v27  ;;  %v5986_v32 = vpop.f32.mrb[14].mxu0  ;;  %v6007_v33 = vadd.f32 %v6006_v31, %v6005_v28  ;;  %v6008_v34 = vpop.f32.mrb[14].mxu1  ;;  %v5586_v27 = vcombine.low %v1958_v11, %v1960_v16  ;;  %v5588_v28 = vcombine.low %v1959_v17, %v1961_v18  ;;  %v1966_v31 = vld [vmem:[#allocation3 + $0x630] sm:$0xff]  ;;  %v6431_v16 = vld [vmem:[#allocation5 + $0x378] sm:$0xff]  }
 0x25d   :  { %v5987_v35 = vpop.f32.mrb[15].mxu0  ;;  %v6009_v37 = vpop.f32.mrb[15].mxu1  ;;  %v5591_v29 = vcombine.high %v1962_v23, %v1964_v24  ;;  %v1968_v32 = vld [vmem:[#allocation3 + $0x6b0] sm:$0xff]  ;;  %v1969_v34 = vld [vmem:[#allocation3 + $0x6b8] sm:$0xff] }
 0x25e   :  { %v1278_v36 = vadd.f32 %v5985_v30, %v1046_v26  ;;  %v1965_v26 = vld [vmem:[#allocation3 + $0x5b8] sm:$0xff]  ;;  %v5590_v35 = vcombine.low %v1962_v23, %v1964_v24  ;;  %v5595_v37 = vcombine.high %v1966_v31, %v1968_v32  ;;  %v6430_v11 = vld [vmem:[#allocation5 + $0x3b0] sm:$0xff]   ;;  %v2564_v24 = vld [vmem:[#allocation3 + $0xc8] sm:$0xff] }
 0x25f   :  { %v5593_v30 = vcombine.high %v1963_v25, %v1965_v26  ;;  %v6432_v17 = vld [vmem:[#allocation5 + $0x3f8] sm:$0xff]  }
 0x260   :  { %v6844_v41 = vadd.f32 %v6007_v33, %v1278_v36  ;;  %v1967_v33 = vld [vmem:[#allocation3 + $0x638] sm:$0xff]  ;;  %v5592_v36 = vcombine.low %v1963_v25, %v1965_v26 }
 0x261   :  { %v6433_v18 = vld [vmem:[#allocation5 + $0x338] sm:$0xff]  }
 0x27a   :  { %v1549_v42 = vpop.f32.mrb[16].mxu0  ;;  %v1590_v44 = vpop.f32.mrb[16].mxu1 }
 0x27b   :  { %v1597_v43 = vmax.f32 %v1549_v42, 0.0  ;;  %v1551_v45 = vpop.f32.mrb[17].mxu0  ;;  %v1599_v46 = vmax.f32 %v1590_v44, 0.0  ;;  %v1592_v48 = vpop.f32.mrb[17].mxu1  ;;  %v5597_v42 = vcombine.high %v1967_v33, %v1969_v34  ;;  %v1972_v44 = vld [vmem:[#allocation3 + $0x7b0] sm:$0xff] }
 0x27c   :  { %v1598_v47 = vmax.f32 %v1551_v45, 0.0  ;;  %v1553_v49 = vpop.f32.mrb[18].mxu0  ;;  %v1600_v51 = vmax.f32 %v1592_v48, 0.0  ;;  %v1594_v52 = vpop.f32.mrb[18].mxu1  ;;  %v1971_v45 = vld [vmem:[#allocation3 + $0x738] sm:$0xff]  ;;  %v5596_v48 = vcombine.low %v1967_v33, %v1969_v34 }
 0x27d   :  { %v1554_v53 = vpop.f32.mrb[19].mxu0  ;;  %v1595_v56 = vpop.f32.mrb[19].mxu1  ;;  %v1601_v57 = vpack.c.bf16 %v1597_v43, %v1597_v43  ;;  %v1603_v60 = vpack.c.bf16 %v1599_v46, %v1599_v46  ;;  %v1970_v43 = vld [vmem:[#allocation3 + $0x730] sm:$0xff]  ;;  %v1973_v46 = vld [vmem:[#allocation3 + $0x7b8] sm:$0xff]  ;;  %v6403_v52 = vld [vmem:[#allocation5 + $0x340] sm:$0xff]  }
 0x27e   :  { %v1602_v55 = vpack.c.bf16 %v1598_v47, %v1598_v47  ;;  %v1604_v58 = vpack.c.bf16 %v1600_v51, %v1600_v51  ;;  %v5594_v47 = vcombine.low %v1966_v31, %v1968_v32  ;;  %v5599_v49 = vcombine.high %v1970_v43, %v1972_v44  ;;  %v6404_v53 = vld [vmem:[#allocation5 + $0x3c0] sm:$0xff]   ;;  %v6408_v56 = vld [vmem:[#allocation5 + $0x3c8] sm:$0xff]  }
 0x27f   :  { %v5601_v50 = vcombine.high %v1971_v45, %v1973_v46  ;;  %v5598_v38 = vcombine.low %v1970_v43, %v1972_v44  ;;  %v5600_v51 = vcombine.low %v1971_v45, %v1973_v46 }
 0x280   :  { %1893 = vmatprep.mubr.bf16.mxu0 %v1602_v55  ;;  %1933 = vmatprep.mubr.bf16.mxu1 %v1604_v58  ;;  %v6407_v55 = vld [vmem:[#allocation5 + $0x348] sm:$0xff]  }
 0x281   :  { %1894 = vmatmul.mubr.bf16.vlgmr.msra.gmra.mrb[20].mxu0 %v1601_v57  ;;  %1934 = vmatmul.mubr.bf16.vlgmr.msra.gmra.mrb[20].mxu1 %v1603_v60  ;;  %v6409_v57 = vld [vmem:[#allocation5 + $0x308] sm:$0xff]   ;;  %v6412_v60 = vld [vmem:[#allocation5 + $0x3d0] sm:$0xff]  }
 0x282   :  { %2135 = vmatpush1.bf16.msra.mxu0 %v5570_v14  ;;  %2176 = vmatpush1.bf16.msra.mxu1 %v5572_v15  ;;  %v5583_v14 = vcombine.high %v1954_v7, %v1956_v8  ;;  %v5585_v15 = vcombine.high %v1955_v9, %v1957_v10  ;;  %v6410_v58 = vld [vmem:[#allocation5 + $0x388] sm:$0xff]   ;;  %v6422_v7 = vld [vmem:[#allocation5 + $0x3a0] sm:$0xff]  }
 0x283   :  { %2136 = vmatprep.subr.bf16.mxu0 %v5575_v59  ;;  %2177 = vmatprep.subr.bf16.mxu1 %v5577_v61  ;;  %v6411_v59 = vld [vmem:[#allocation5 + $0x350] sm:$0xff]   ;;  %v6423_v8 = vld [vmem:[#allocation5 + $0x368] sm:$0xff]  }
 0x284   :  { %2166 = vmatprep.mubr.bf16.mxu0 %v6708_v0  ;;  %2207 = vmatprep.mubr.bf16.mxu1 %v6708_v0  ;;  %v6413_v61 = vld [vmem:[#allocation5 + $0x310] sm:$0xff]   ;;  %v6424_v9 = vld [vmem:[#allocation5 + $0x3e8] sm:$0xff]  }
 0x285   :  { %v6425_v10 = vld [vmem:[#allocation5 + $0x328] sm:$0xff]  }
 0x286   :  { %2137 = vmatpush1.bf16.msra.mxu0 %v5574_v3  ;;  %2178 = vmatpush1.bf16.msra.mxu1 %v5576_v4  ;;  %v6418_v3 = vld [vmem:[#allocation5 + $0x398] sm:$0xff]   ;;  %v6419_v4 = vld [vmem:[#allocation5 + $0x360] sm:$0xff]  }
 0x287   :  { %2138 = vmatprep.subr.bf16.mxu0 %v5579_v5  ;;  %2179 = vmatprep.subr.bf16.mxu1 %v5581_v6  ;;  %v6420_v5 = vld [vmem:[#allocation5 + $0x3e0] sm:$0xff]  }
 0x288   :  { %v6421_v6 = vld [vmem:[#allocation5 + $0x320] sm:$0xff]  }
 0x28a   :  { %2139 = vmatpush1.bf16.msra.mxu0 %v5578_v12  ;;  %2180 = vmatpush1.bf16.msra.mxu1 %v5580_v13  ;;  %v6426_v12 = vld [vmem:[#allocation5 + $0x3a8] sm:$0xff]   ;;  %v6427_v13 = vld [vmem:[#allocation5 + $0x370] sm:$0xff]  }
 0x28b   :  { %2140 = vmatprep.subr.bf16.mxu0 %v5583_v14  ;;  %2181 = vmatprep.subr.bf16.mxu1 %v5585_v15  ;;  %v6428_v14 = vld [vmem:[#allocation5 + $0x3f0] sm:$0xff]  }
 0x28c   :  { %v6429_v15 = vld [vmem:[#allocation5 + $0x330] sm:$0xff]  }
 0x28e   :  { %2141 = vmatpush1.bf16.msra.mxu0 %v5582_v19  ;;  %2182 = vmatpush1.bf16.msra.mxu1 %v5584_v20  ;;  %v6434_v19 = vld [vmem:[#allocation5 + $0x3b8] sm:$0xff]   ;;  %v2561_v20 = vld [vmem:[#allocation3 + $0x40] sm:$0xff] }
 0x28f   :  { %2142 = vmatprep.subr.bf16.mxu0 %v5587_v21  ;;  %2183 = vmatprep.subr.bf16.mxu1 %v5589_v22  ;;  %v2563_v21 = vld [vmem:[#allocation3 + $0xc0] sm:$0xff]  ;;  %v2562_v22 = vld [vmem:[#allocation3 + $0x48] sm:$0xff] }
 0x290   :  { %v5635_v23 = vcombine.high %v2561_v20, %v2563_v21  ;;  %v5634_v25 = vcombine.low %v2561_v20, %v2563_v21  ;;  %v5636_v26 = vcombine.low %v2562_v22, %v2564_v24 }
 0x292   :  { %2143 = vmatpush1.bf16.msra.mxu0 %v5586_v27  ;;  %2184 = vmatpush1.bf16.msra.mxu1 %v5588_v28  ;;  %v5637_v27 = vcombine.high %v2562_v22, %v2564_v24  ;;  %v2581_v24 = vld [vmem:[#allocation3 + $0x540] sm:$0xff] }
 0x293   :  { %2144 = vmatprep.subr.bf16.mxu0 %v5591_v29  ;;  %2185 = vmatprep.subr.bf16.mxu1 %v5593_v30 }
 0x296   :  { %2145 = vmatpush1.bf16.msra.mxu0 %v5590_v35  ;;  %2186 = vmatpush1.bf16.msra.mxu1 %v5592_v36 }
 0x297   :  { %2146 = vmatprep.subr.bf16.mxu0 %v5595_v37  ;;  %2187 = vmatprep.subr.bf16.mxu1 %v5597_v42 }
 0x29a   :  { %2147 = vmatpush1.bf16.msra.mxu0 %v5594_v47  ;;  %2188 = vmatpush1.bf16.msra.mxu1 %v5596_v48 }
 0x29b   :  { %2148 = vmatprep.subr.bf16.mxu0 %v5599_v49  ;;  %2189 = vmatprep.subr.bf16.mxu1 %v5601_v50 }
 0x29e   :  { %2149 = vmatpush1.bf16.msra.mxu0 %v5598_v38  ;;  %2190 = vmatpush1.bf16.msra.mxu1 %v5600_v51  ;;  %v2565_v51 = vld [vmem:[#allocation3 + $0x140] sm:$0xff] }
 0x29f   :  { %6055 = vmatprep.subr.bf16.mxu0 %v6403_v52  ;;  %6077 = vmatprep.subr.bf16.mxu1 %v6404_v53  ;;  %v2567_v52 = vld [vmem:[#allocation3 + $0x1c0] sm:$0xff] }
 0x2a1   :  { %2167 = vmatmul.mubr.bf16.vlgmr.msra.gmra.mrb[24].mxu0 %v6832_v40  ;;  %2208 = vmatmul.mubr.bf16.vlgmr.msra.gmra.mrb[24].mxu1 %v6832_v40 }
 0x2a2   :  { %6056 = vmatpush3.bf16.msra.mxu0 %v6405_v39  ;;  %6078 = vmatpush3.bf16.msra.mxu1 %v6406_v54 }
 0x2a3   :  { %6057 = vmatprep.subr.bf16.mxu0 %v6407_v55  ;;  %6079 = vmatprep.subr.bf16.mxu1 %v6408_v56  ;;  %v2566_v55 = vld [vmem:[#allocation3 + $0x148] sm:$0xff] }
 0x2a4   :  { %v2568_v56 = vld [vmem:[#allocation3 + $0x1c8] sm:$0xff] }
 0x2a6   :  { %6058 = vmatpush3.bf16.msra.mxu0 %v6409_v57  ;;  %6080 = vmatpush3.bf16.msra.mxu1 %v6410_v58 }
 0x2a7   :  { %6059 = vmatprep.subr.bf16.mxu0 %v6411_v59  ;;  %6081 = vmatprep.subr.bf16.mxu1 %v6412_v60  ;;  %v5639_v60 = vcombine.high %v2565_v51, %v2567_v52 }
 0x2aa   :  { %6060 = vmatpush3.bf16.msra.mxu0 %v6413_v61  ;;  %6082 = vmatpush3.bf16.msra.mxu1 %v6414_v62  ;;  %v5641_v62 = vcombine.high %v2566_v55, %v2568_v56 }
 0x2ab   :  { %6061 = vmatprep.subr.bf16.mxu0 %v6415_v63  ;;  %6083 = vmatprep.subr.bf16.mxu1 %v6416_v1  ;;  %v2569_v63 = vld [vmem:[#allocation3 + $0x240] sm:$0xff] }
 0x2ac   :  { %v2571_v1 = vld [vmem:[#allocation3 + $0x2c0] sm:$0xff] }
 0x2ae   :  { %6062 = vmatpush3.bf16.msra.mxu0 %v6417_v2  ;;  %6084 = vmatpush3.bf16.msra.mxu1 %v6418_v3  ;;  %v2570_v2 = vld [vmem:[#allocation3 + $0x248] sm:$0xff] }
 0x2af   :  { %6063 = vmatprep.subr.bf16.mxu0 %v6419_v4  ;;  %6085 = vmatprep.subr.bf16.mxu1 %v6420_v5  ;;  %v2572_v3 = vld [vmem:[#allocation3 + $0x2c8] sm:$0xff]  ;;  %v5638_v4 = vcombine.low %v2565_v51, %v2567_v52  ;;  %v5640_v5 = vcombine.low %v2566_v55, %v2568_v56  ;;  %v6437_v55 = vld [vmem:[#allocation5 + $0x400] sm:$0xff]  }
 0x2b0   :  { %v6438_v56 = vld [vmem:[#allocation5 + $0x480] sm:$0xff]  }
 0x2b2   :  { %6064 = vmatpush3.bf16.msra.mxu0 %v6421_v6  ;;  %6086 = vmatpush3.bf16.msra.mxu1 %v6422_v7  ;;  %v5643_v6 = vcombine.high %v2569_v63, %v2571_v1  ;;  %v5645_v7 = vcombine.high %v2570_v2, %v2572_v3 }
 0x2b3   :  { %6065 = vmatprep.subr.bf16.mxu0 %v6423_v8  ;;  %6087 = vmatprep.subr.bf16.mxu1 %v6424_v9  ;;  %v2573_v8 = vld [vmem:[#allocation3 + $0x340] sm:$0xff] }
 0x2b4   :  { %v2575_v9 = vld [vmem:[#allocation3 + $0x3c0] sm:$0xff] }
 0x2b5   :  { %v5646_v20 = vcombine.low %v2573_v8, %v2575_v9 }
 0x2b6   :  { %6066 = vmatpush3.bf16.msra.mxu0 %v6425_v10  ;;  %6088 = vmatpush3.bf16.msra.mxu1 %v6426_v12  ;;  %v2574_v10 = vld [vmem:[#allocation3 + $0x348] sm:$0xff] }
 0x2b7   :  { %6067 = vmatprep.subr.bf16.mxu0 %v6427_v13  ;;  %6089 = vmatprep.subr.bf16.mxu1 %v6428_v14  ;;  %v2576_v12 = vld [vmem:[#allocation3 + $0x3c8] sm:$0xff]  ;;  %v5642_v13 = vcombine.low %v2569_v63, %v2571_v1  ;;  %v5644_v14 = vcombine.low %v2570_v2, %v2572_v3  ;;  %v6447_v63 = vld [vmem:[#allocation5 + $0x458] sm:$0xff]  }
 0x2b8   :  { %v5648_v21 = vcombine.low %v2574_v10, %v2576_v12  ;;  %v6448_v1 = vld [vmem:[#allocation5 + $0x4d8] sm:$0xff]  }
 0x2b9   :  { %v6449_v2 = vld [vmem:[#allocation5 + $0x418] sm:$0xff]  }
 0x2ba   :  { %6068 = vmatpush3.bf16.msra.mxu0 %v6429_v15  ;;  %6090 = vmatpush3.bf16.msra.mxu1 %v6430_v11  ;;  %v5647_v15 = vcombine.high %v2573_v8, %v2575_v9  ;;  %v5649_v11 = vcombine.high %v2574_v10, %v2576_v12  ;;  %v6450_v3 = vld [vmem:[#allocation5 + $0x498] sm:$0xff]   ;;  %v6455_v8 = vld [vmem:[#allocation5 + $0x468] sm:$0xff]  }
 0x2bb   :  { %6069 = vmatprep.subr.bf16.mxu0 %v6431_v16  ;;  %6091 = vmatprep.subr.bf16.mxu1 %v6432_v17  ;;  %v2577_v16 = vld [vmem:[#allocation3 + $0x440] sm:$0xff]  ;;  %v6456_v9 = vld [vmem:[#allocation5 + $0x4e8] sm:$0xff]  }
 0x2bc   :  { %v2579_v17 = vld [vmem:[#allocation3 + $0x4c0] sm:$0xff]  ;;  %v6457_v10 = vld [vmem:[#allocation5 + $0x428] sm:$0xff]  }
 0x2bd   :  { %v5651_v22 = vcombine.high %v2577_v16, %v2579_v17  ;;  %v6458_v12 = vld [vmem:[#allocation5 + $0x4a8] sm:$0xff]  }
 0x2be   :  { %6070 = vmatpush3.bf16.msra.mxu0 %v6433_v18  ;;  %6092 = vmatpush3.bf16.msra.mxu1 %v6434_v19  ;;  %v2578_v18 = vld [vmem:[#allocation3 + $0x448] sm:$0xff] }
 0x2bf   :  { %2753 = vmatprep.subr.bf16.mxu0 %v5635_v23  ;;  %2794 = vmatprep.subr.bf16.mxu1 %v5637_v27  ;;  %v2580_v19 = vld [vmem:[#allocation3 + $0x4c8] sm:$0xff] }
 0x2c0   :  { %v5653_v23 = vcombine.high %v2578_v18, %v2580_v19  ;;  %v2584_v27 = vld [vmem:[#allocation3 + $0x5c8] sm:$0xff] }
 0x354   :  { %v6027_v28 = vpop.f32.mrb[20].mxu0  ;;  %v6049_v29 = vpop.f32.mrb[20].mxu1 }
 0x355   :  { %v6028_v30 = vpop.f32.mrb[21].mxu0  ;;  %v6050_v32 = vpop.f32.mrb[21].mxu1 }
 0x356   :  { %v6029_v31 = vadd.f32 %v6028_v30, %v6027_v28  ;;  %v6030_v33 = vpop.f32.mrb[22].mxu0  ;;  %v6051_v34 = vadd.f32 %v6050_v32, %v6049_v29  ;;  %v6052_v35 = vpop.f32.mrb[22].mxu1  ;;  %v5650_v28 = vcombine.low %v2577_v16, %v2579_v17  ;;  %v5652_v29 = vcombine.low %v2578_v18, %v2580_v19  ;;  %v2585_v32 = vld [vmem:[#allocation3 + $0x640] sm:$0xff]  ;;  %v6463_v16 = vld [vmem:[#allocation5 + $0x478] sm:$0xff]  }
 0x357   :  { %v6031_v36 = vpop.f32.mrb[23].mxu0  ;;  %v6053_v37 = vpop.f32.mrb[23].mxu1  ;;  %v2587_v33 = vld [vmem:[#allocation3 + $0x6c0] sm:$0xff]  ;;  %v2588_v35 = vld [vmem:[#allocation3 + $0x6c8] sm:$0xff]  ;;  %v6464_v17 = vld [vmem:[#allocation5 + $0x4f8] sm:$0xff]  }
 0x358   :  { %v1936_v42 = vadd.f32 %v6051_v34, %v6029_v31  ;;  %v2586_v34 = vld [vmem:[#allocation3 + $0x648] sm:$0xff]  ;;  %v6465_v18 = vld [vmem:[#allocation5 + $0x438] sm:$0xff]  }
 0x359   :  { %v6466_v19 = vld [vmem:[#allocation5 + $0x4b8] sm:$0xff]  }
 0x35a   :  { %v6851_v43 = vadd.f32 %v1936_v42, %v6844_v41  ;;  %v5659_v42 = vcombine.high %v2585_v32, %v2587_v33 }
 0x374   :  { %v2168_v44 = vpop.f32.mrb[24].mxu0  ;;  %v2209_v46 = vpop.f32.mrb[24].mxu1 }
 0x375   :  { %v2216_v45 = vmax.f32 %v2168_v44, 0.0  ;;  %v2170_v47 = vpop.f32.mrb[25].mxu0  ;;  %v2218_v48 = vmax.f32 %v2209_v46, 0.0  ;;  %v2211_v50 = vpop.f32.mrb[25].mxu1  ;;  %v5661_v44 = vcombine.high %v2586_v34, %v2588_v35  ;;  %v2591_v46 = vld [vmem:[#allocation3 + $0x7c0] sm:$0xff] }
 0x376   :  { %v2217_v49 = vmax.f32 %v2170_v47, 0.0  ;;  %v2172_v38 = vpop.f32.mrb[26].mxu0  ;;  %v2219_v53 = vmax.f32 %v2211_v50, 0.0  ;;  %v2213_v39 = vpop.f32.mrb[26].mxu1  ;;  %v2590_v47 = vld [vmem:[#allocation3 + $0x748] sm:$0xff]  ;;  %v5660_v50 = vcombine.low %v2586_v34, %v2588_v35 }
 0x377   :  { %v2173_v54 = vpop.f32.mrb[27].mxu0  ;;  %v2214_v58 = vpop.f32.mrb[27].mxu1  ;;  %v2220_v59 = vpack.c.bf16 %v2216_v45, %v2216_v45  ;;  %v2222_v61 = vpack.c.bf16 %v2218_v48, %v2218_v48  ;;  %v2589_v45 = vld [vmem:[#allocation3 + $0x740] sm:$0xff]  ;;  %v2592_v48 = vld [vmem:[#allocation3 + $0x7c8] sm:$0xff] }
 0x378   :  { %v2221_v57 = vpack.c.bf16 %v2217_v49, %v2217_v49  ;;  %v2223_v41 = vpack.c.bf16 %v2219_v53, %v2219_v53  ;;  %v5658_v49 = vcombine.low %v2585_v32, %v2587_v33  ;;  %v5663_v38 = vcombine.high %v2589_v45, %v2591_v46  ;;  %v6435_v39 = vld [vmem:[#allocation5 + $0x440] sm:$0xff]   ;;  %v6440_v58 = vld [vmem:[#allocation5 + $0x4c8] sm:$0xff]  }
 0x379   :  { %v5665_v51 = vcombine.high %v2590_v47, %v2592_v48  ;;  %v5662_v52 = vcombine.low %v2589_v45, %v2591_v46  ;;  %v5664_v53 = vcombine.low %v2590_v47, %v2592_v48  ;;  %v6436_v54 = vld [vmem:[#allocation5 + $0x4c0] sm:$0xff]  }
 0x37a   :  { %2512 = vmatprep.mubr.bf16.mxu0 %v2221_v57  ;;  %2552 = vmatprep.mubr.bf16.mxu1 %v2223_v41  ;;  %v6439_v57 = vld [vmem:[#allocation5 + $0x448] sm:$0xff]  }
 0x37b   :  { %2513 = vmatmul.mubr.bf16.vlgmr.msra.gmra.mrb[28].mxu0 %v2220_v59  ;;  %2553 = vmatmul.mubr.bf16.vlgmr.msra.gmra.mrb[28].mxu1 %v2222_v61  ;;  %v6441_v59 = vld [vmem:[#allocation5 + $0x408] sm:$0xff]   ;;  %v6444_v61 = vld [vmem:[#allocation5 + $0x4d0] sm:$0xff]  }
 0x37c   :  { %2754 = vmatpush1.bf16.msra.mxu0 %v5634_v25  ;;  %2795 = vmatpush1.bf16.msra.mxu1 %v5636_v26  ;;  %v2583_v25 = vld [vmem:[#allocation3 + $0x5c0] sm:$0xff]  ;;  %v2582_v26 = vld [vmem:[#allocation3 + $0x548] sm:$0xff] }
 0x37d   :  { %2755 = vmatprep.subr.bf16.mxu0 %v5639_v60  ;;  %2796 = vmatprep.subr.bf16.mxu1 %v5641_v62  ;;  %v5655_v30 = vcombine.high %v2581_v24, %v2583_v25  ;;  %v5657_v31 = vcombine.high %v2582_v26, %v2584_v27  ;;  %v5654_v36 = vcombine.low %v2581_v24, %v2583_v25  ;;  %v6442_v41 = vld [vmem:[#allocation5 + $0x488] sm:$0xff]   ;;  %v6443_v60 = vld [vmem:[#allocation5 + $0x450] sm:$0xff]   ;;  %v3183_v24 = vld [vmem:[#allocation3 + $0xd8] sm:$0xff] }
 0x37e   :  { %2785 = vmatprep.mubr.bf16.mxu0 %v6708_v0  ;;  %2826 = vmatprep.mubr.bf16.mxu1 %v6708_v0  ;;  %v5656_v37 = vcombine.low %v2582_v26, %v2584_v27  ;;  %v6445_v62 = vld [vmem:[#allocation5 + $0x410] sm:$0xff]  }
 0x380   :  { %2756 = vmatpush1.bf16.msra.mxu0 %v5638_v4  ;;  %2797 = vmatpush1.bf16.msra.mxu1 %v5640_v5  ;;  %v6451_v4 = vld [vmem:[#allocation5 + $0x460] sm:$0xff]  }
 0x381   :  { %2757 = vmatprep.subr.bf16.mxu0 %v5643_v6  ;;  %2798 = vmatprep.subr.bf16.mxu1 %v5645_v7  ;;  %v6452_v5 = vld [vmem:[#allocation5 + $0x4e0] sm:$0xff]  }
 0x382   :  { %v6453_v6 = vld [vmem:[#allocation5 + $0x420] sm:$0xff]  }
 0x383   :  { %v6454_v7 = vld [vmem:[#allocation5 + $0x4a0] sm:$0xff]  }
 0x384   :  { %2758 = vmatpush1.bf16.msra.mxu0 %v5642_v13  ;;  %2799 = vmatpush1.bf16.msra.mxu1 %v5644_v14  ;;  %v6459_v13 = vld [vmem:[#allocation5 + $0x470] sm:$0xff]  }
 0x385   :  { %2759 = vmatprep.subr.bf16.mxu0 %v5647_v15  ;;  %2800 = vmatprep.subr.bf16.mxu1 %v5649_v11  ;;  %v6460_v14 = vld [vmem:[#allocation5 + $0x4f0] sm:$0xff]  }
 0x386   :  { %v6461_v15 = vld [vmem:[#allocation5 + $0x430] sm:$0xff]  }
 0x387   :  { %v6462_v11 = vld [vmem:[#allocation5 + $0x4b0] sm:$0xff]  }
 0x388   :  { %2760 = vmatpush1.bf16.msra.mxu0 %v5646_v20  ;;  %2801 = vmatpush1.bf16.msra.mxu1 %v5648_v21  ;;  %v3180_v20 = vld [vmem:[#allocation3 + $0x50] sm:$0xff] }
 0x389   :  { %2761 = vmatprep.subr.bf16.mxu0 %v5651_v22  ;;  %2802 = vmatprep.subr.bf16.mxu1 %v5653_v23  ;;  %v3182_v21 = vld [vmem:[#allocation3 + $0xd0] sm:$0xff]  ;;  %v3181_v22 = vld [vmem:[#allocation3 + $0x58] sm:$0xff] }
 0x38a   :  { %v5699_v23 = vcombine.high %v3180_v20, %v3182_v21  ;;  %v5698_v25 = vcombine.low %v3180_v20, %v3182_v21  ;;  %v5700_v26 = vcombine.low %v3181_v22, %v3183_v24  ;;  %v5701_v27 = vcombine.high %v3181_v22, %v3183_v24  ;;  %v3202_v24 = vld [vmem:[#allocation3 + $0x5d0] sm:$0xff] }
 0x38c   :  { %2762 = vmatpush1.bf16.msra.mxu0 %v5650_v28  ;;  %2803 = vmatpush1.bf16.msra.mxu1 %v5652_v29 }
 0x38d   :  { %2763 = vmatprep.subr.bf16.mxu0 %v5655_v30  ;;  %2804 = vmatprep.subr.bf16.mxu1 %v5657_v31 }
 0x390   :  { %2764 = vmatpush1.bf16.msra.mxu0 %v5654_v36  ;;  %2805 = vmatpush1.bf16.msra.mxu1 %v5656_v37 }
 0x391   :  { %2765 = vmatprep.subr.bf16.mxu0 %v5659_v42  ;;  %2806 = vmatprep.subr.bf16.mxu1 %v5661_v44 }
 0x394   :  { %2766 = vmatpush1.bf16.msra.mxu0 %v5658_v49  ;;  %2807 = vmatpush1.bf16.msra.mxu1 %v5660_v50 }
 0x395   :  { %2767 = vmatprep.subr.bf16.mxu0 %v5663_v38  ;;  %2808 = vmatprep.subr.bf16.mxu1 %v5665_v51 }
 0x398   :  { %2768 = vmatpush1.bf16.msra.mxu0 %v5662_v52  ;;  %2809 = vmatpush1.bf16.msra.mxu1 %v5664_v53  ;;  %v3184_v52 = vld [vmem:[#allocation3 + $0x150] sm:$0xff] }
 0x399   :  { %6099 = vmatprep.subr.bf16.mxu0 %v6435_v39  ;;  %6121 = vmatprep.subr.bf16.mxu1 %v6436_v54  ;;  %v3186_v53 = vld [vmem:[#allocation3 + $0x1d0] sm:$0xff] }
 0x39b   :  { %2786 = vmatmul.mubr.bf16.vlgmr.msra.gmra.mrb[32].mxu0 %v6832_v40  ;;  %2827 = vmatmul.mubr.bf16.vlgmr.msra.gmra.mrb[32].mxu1 %v6832_v40  ;;  %v6446_v40 = vld [vmem:[#allocation5 + $0x490] sm:$0xff]  }
 0x39c   :  { %6100 = vmatpush3.bf16.msra.mxu0 %v6437_v55  ;;  %6122 = vmatpush3.bf16.msra.mxu1 %v6438_v56  ;;  %v3185_v56 = vld [vmem:[#allocation3 + $0x158] sm:$0xff] }
 0x39d   :  { %6101 = vmatprep.subr.bf16.mxu0 %v6439_v57  ;;  %6123 = vmatprep.subr.bf16.mxu1 %v6440_v58  ;;  %v3187_v57 = vld [vmem:[#allocation3 + $0x1d8] sm:$0xff] }
 0x3a0   :  { %6102 = vmatpush3.bf16.msra.mxu0 %v6441_v59  ;;  %6124 = vmatpush3.bf16.msra.mxu1 %v6442_v41 }
 0x3a1   :  { %6103 = vmatprep.subr.bf16.mxu0 %v6443_v60  ;;  %6125 = vmatprep.subr.bf16.mxu1 %v6444_v61  ;;  %v5703_v60 = vcombine.high %v3184_v52, %v3186_v53 }
 0x3a4   :  { %6104 = vmatpush3.bf16.msra.mxu0 %v6445_v62  ;;  %6126 = vmatpush3.bf16.msra.mxu1 %v6446_v40  ;;  %v5705_v62 = vcombine.high %v3185_v56, %v3187_v57  ;;  %v3188_v40 = vld [vmem:[#allocation3 + $0x250] sm:$0xff] }
 0x3a5   :  { %6105 = vmatprep.subr.bf16.mxu0 %v6447_v63  ;;  %6127 = vmatprep.subr.bf16.mxu1 %v6448_v1  ;;  %v3190_v63 = vld [vmem:[#allocation3 + $0x2d0] sm:$0xff]  ;;  %v3189_v1 = vld [vmem:[#allocation3 + $0x258] sm:$0xff] }
 0x3a8   :  { %6106 = vmatpush3.bf16.msra.mxu0 %v6449_v2  ;;  %6128 = vmatpush3.bf16.msra.mxu1 %v6450_v3  ;;  %v3191_v2 = vld [vmem:[#allocation3 + $0x2d8] sm:$0xff]  ;;  %v5702_v3 = vcombine.low %v3184_v52, %v3186_v53 }
 0x3a9   :  { %6107 = vmatprep.subr.bf16.mxu0 %v6451_v4  ;;  %6129 = vmatprep.subr.bf16.mxu1 %v6452_v5  ;;  %v5704_v4 = vcombine.low %v3185_v56, %v3187_v57  ;;  %v5707_v5 = vcombine.high %v3188_v40, %v3190_v63  ;;  %v6469_v56 = vld [vmem:[#allocation5 + $0x500] sm:$0xff]  }
 0x3aa   :  { %v6470_v57 = vld [vmem:[#allocation5 + $0x580] sm:$0xff]  }
 0x3ac   :  { %6108 = vmatpush3.bf16.msra.mxu0 %v6453_v6  ;;  %6130 = vmatpush3.bf16.msra.mxu1 %v6454_v7  ;;  %v5709_v6 = vcombine.high %v3189_v1, %v3191_v2  ;;  %v3192_v7 = vld [vmem:[#allocation3 + $0x350] sm:$0xff] }
 0x3ad   :  { %6109 = vmatprep.subr.bf16.mxu0 %v6455_v8  ;;  %6131 = vmatprep.subr.bf16.mxu1 %v6456_v9  ;;  %v3194_v8 = vld [vmem:[#allocation3 + $0x3d0] sm:$0xff]  ;;  %v3193_v9 = vld [vmem:[#allocation3 + $0x358] sm:$0xff] }
 0x3b0   :  { %6110 = vmatpush3.bf16.msra.mxu0 %v6457_v10  ;;  %6132 = vmatpush3.bf16.msra.mxu1 %v6458_v12  ;;  %v3195_v10 = vld [vmem:[#allocation3 + $0x3d8] sm:$0xff]  ;;  %v5706_v12 = vcombine.low %v3188_v40, %v3190_v63  ;;  %v6478_v40 = vld [vmem:[#allocation5 + $0x590] sm:$0xff]  }
 0x3b1   :  { %6111 = vmatprep.subr.bf16.mxu0 %v6459_v13  ;;  %6133 = vmatprep.subr.bf16.mxu1 %v6460_v14  ;;  %v5708_v13 = vcombine.low %v3189_v1, %v3191_v2  ;;  %v5711_v14 = vcombine.high %v3192_v7, %v3194_v8  ;;  %v5712_v20 = vcombine.low %v3193_v9, %v3195_v10  ;;  %v6479_v63 = vld [vmem:[#allocation5 + $0x558] sm:$0xff]  }
 0x3b2   :  { %v6480_v1 = vld [vmem:[#allocation5 + $0x5d8] sm:$0xff]  }
 0x3b3   :  { %v6481_v2 = vld [vmem:[#allocation5 + $0x518] sm:$0xff]  }
 0x3b4   :  { %6112 = vmatpush3.bf16.msra.mxu0 %v6461_v15  ;;  %6134 = vmatpush3.bf16.msra.mxu1 %v6462_v11  ;;  %v5713_v15 = vcombine.high %v3193_v9, %v3195_v10  ;;  %v3196_v11 = vld [vmem:[#allocation3 + $0x450] sm:$0xff]  ;;  %v6488_v9 = vld [vmem:[#allocation5 + $0x5e8] sm:$0xff]  }
 0x3b5   :  { %6113 = vmatprep.subr.bf16.mxu0 %v6463_v16  ;;  %6135 = vmatprep.subr.bf16.mxu1 %v6464_v17  ;;  %v3198_v16 = vld [vmem:[#allocation3 + $0x4d0] sm:$0xff]  ;;  %v3197_v17 = vld [vmem:[#allocation3 + $0x458] sm:$0xff]  ;;  %v6489_v10 = vld [vmem:[#allocation5 + $0x528] sm:$0xff]  }
 0x3b6   :  { %v5715_v21 = vcombine.high %v3196_v11, %v3198_v16 }
 0x3b8   :  { %6114 = vmatpush3.bf16.msra.mxu0 %v6465_v18  ;;  %6136 = vmatpush3.bf16.msra.mxu1 %v6466_v19  ;;  %v3199_v18 = vld [vmem:[#allocation3 + $0x4d8] sm:$0xff]  ;;  %v5710_v19 = vcombine.low %v3192_v7, %v3194_v8  ;;  %v6486_v7 = vld [vmem:[#allocation5 + $0x5a0] sm:$0xff]   ;;  %v6487_v8 = vld [vmem:[#allocation5 + $0x568] sm:$0xff]  }
 0x3b9   :  { %3372 = vmatprep.subr.bf16.mxu0 %v5699_v23  ;;  %3413 = vmatprep.subr.bf16.mxu1 %v5701_v27  ;;  %v5717_v22 = vcombine.high %v3197_v17, %v3199_v18  ;;  %v3200_v23 = vld [vmem:[#allocation3 + $0x550] sm:$0xff]  ;;  %v5714_v27 = vcombine.low %v3196_v11, %v3198_v16  ;;  %v6495_v16 = vld [vmem:[#allocation5 + $0x578] sm:$0xff]  }
 0x3ba   :  { %v6494_v11 = vld [vmem:[#allocation5 + $0x5b0] sm:$0xff]  }
 0x44e   :  { %v6071_v28 = vpop.f32.mrb[28].mxu0  ;;  %v6093_v29 = vpop.f32.mrb[28].mxu1 }
 0x44f   :  { %v6072_v30 = vpop.f32.mrb[29].mxu0  ;;  %v6094_v32 = vpop.f32.mrb[29].mxu1 }
 0x450   :  { %v6073_v31 = vadd.f32 %v6072_v30, %v6071_v28  ;;  %v6074_v33 = vpop.f32.mrb[30].mxu0  ;;  %v6095_v34 = vadd.f32 %v6094_v32, %v6093_v29  ;;  %v6096_v35 = vpop.f32.mrb[30].mxu1  ;;  %v5716_v28 = vcombine.low %v3197_v17, %v3199_v18  ;;  %v5719_v29 = vcombine.high %v3200_v23, %v3202_v24  ;;  %v3206_v32 = vld [vmem:[#allocation3 + $0x6d0] sm:$0xff]  ;;  %v6496_v17 = vld [vmem:[#allocation5 + $0x5f8] sm:$0xff]  }
 0x451   :  { %v6075_v36 = vpop.f32.mrb[31].mxu0  ;;  %v6097_v37 = vpop.f32.mrb[31].mxu1  ;;  %v3205_v33 = vld [vmem:[#allocation3 + $0x658] sm:$0xff]  ;;  %v5718_v35 = vcombine.low %v3200_v23, %v3202_v24  ;;  %v3802_v24 = vld [vmem:[#allocation3 + $0xe8] sm:$0xff] }
 0x452   :  { %v2555_v42 = vadd.f32 %v6095_v34, %v6073_v31  ;;  %v3204_v31 = vld [vmem:[#allocation3 + $0x650] sm:$0xff]  ;;  %v3207_v34 = vld [vmem:[#allocation3 + $0x6d8] sm:$0xff] }
 0x453   :  { %v5723_v37 = vcombine.high %v3204_v31, %v3206_v32  ;;  %v6497_v18 = vld [vmem:[#allocation5 + $0x538] sm:$0xff]  }
 0x454   :  { %v6858_v44 = vadd.f32 %v2555_v42, %v6851_v43  ;;  %v5725_v42 = vcombine.high %v3205_v33, %v3207_v34 }
 0x46e   :  { %v2787_v45 = vpop.f32.mrb[32].mxu0  ;;  %v2828_v47 = vpop.f32.mrb[32].mxu1 }
 0x46f   :  { %v2835_v46 = vmax.f32 %v2787_v45, 0.0  ;;  %v2789_v48 = vpop.f32.mrb[33].mxu0  ;;  %v2837_v49 = vmax.f32 %v2828_v47, 0.0  ;;  %v2830_v38 = vpop.f32.mrb[33].mxu1  ;;  %v3208_v45 = vld [vmem:[#allocation3 + $0x750] sm:$0xff]  ;;  %v3209_v47 = vld [vmem:[#allocation3 + $0x758] sm:$0xff] }
 0x470   :  { %v2836_v50 = vmax.f32 %v2789_v48, 0.0  ;;  %v2791_v51 = vpop.f32.mrb[34].mxu0  ;;  %v2838_v39 = vmax.f32 %v2830_v38, 0.0  ;;  %v2832_v54 = vpop.f32.mrb[34].mxu1  ;;  %v3211_v48 = vld [vmem:[#allocation3 + $0x7d8] sm:$0xff] }
 0x471   :  { %v2792_v55 = vpop.f32.mrb[35].mxu0  ;;  %v2833_v59 = vpop.f32.mrb[35].mxu1  ;;  %v2839_v41 = vpack.c.bf16 %v2835_v46, %v2835_v46  ;;  %v2841_v61 = vpack.c.bf16 %v2837_v49, %v2837_v49  ;;  %v3210_v46 = vld [vmem:[#allocation3 + $0x7d0] sm:$0xff]  ;;  %v5722_v49 = vcombine.low %v3204_v31, %v3206_v32  ;;  %v5729_v51 = vcombine.high %v3209_v47, %v3211_v48  ;;  %v6467_v54 = vld [vmem:[#allocation5 + $0x540] sm:$0xff]  }
 0x472   :  { %v2840_v58 = vpack.c.bf16 %v2836_v50, %v2836_v50  ;;  %v2842_v43 = vpack.c.bf16 %v2838_v39, %v2838_v39  ;;  %v5724_v50 = vcombine.low %v3205_v33, %v3207_v34  ;;  %v5727_v38 = vcombine.high %v3208_v45, %v3210_v46  ;;  %v6865_v39 = vld [vmem:[%s6900_s0] sm:$0xf]  ;;  %v6472_v59 = vld [vmem:[#allocation5 + $0x5c8] sm:$0xff]  }
 0x473   :  { %v5726_v52 = vcombine.low %v3208_v45, %v3210_v46  ;;  %v5728_v53 = vcombine.low %v3209_v47, %v3211_v48  ;;  %v6468_v55 = vld [vmem:[#allocation5 + $0x5c0] sm:$0xff]  }
 0x474   :  { %3131 = vmatprep.mubr.bf16.mxu0 %v2840_v58  ;;  %3171 = vmatprep.mubr.bf16.mxu1 %v2842_v43  ;;  %v6471_v58 = vld [vmem:[#allocation5 + $0x548] sm:$0xff]  }
 0x475   :  { %3132 = vmatmul.mubr.bf16.vlgmr.msra.gmra.mrb[36].mxu0 %v2839_v41  ;;  %3172 = vmatmul.mubr.bf16.vlgmr.msra.gmra.mrb[36].mxu1 %v2841_v61  ;;  %v6473_v41 = vld [vmem:[#allocation5 + $0x508] sm:$0xff]   ;;  %v6476_v61 = vld [vmem:[#allocation5 + $0x5d0] sm:$0xff]  }
 0x476   :  { %3373 = vmatpush1.bf16.msra.mxu0 %v5698_v25  ;;  %3414 = vmatpush1.bf16.msra.mxu1 %v5700_v26  ;;  %v3201_v25 = vld [vmem:[#allocation3 + $0x558] sm:$0xff]  ;;  %v6474_v43 = vld [vmem:[#allocation5 + $0x588] sm:$0xff]  }
 0x477   :  { %3374 = vmatprep.subr.bf16.mxu0 %v5703_v60  ;;  %3415 = vmatprep.subr.bf16.mxu1 %v5705_v62  ;;  %v3203_v26 = vld [vmem:[#allocation3 + $0x5d8] sm:$0xff]  ;;  %v6475_v60 = vld [vmem:[#allocation5 + $0x550] sm:$0xff]  }
 0x478   :  { %3404 = vmatprep.mubr.bf16.mxu0 %v6708_v0  ;;  %3445 = vmatprep.mubr.bf16.mxu1 %v6708_v0  ;;  %v5721_v30 = vcombine.high %v3201_v25, %v3203_v26  ;;  %v5720_v36 = vcombine.low %v3201_v25, %v3203_v26  ;;  %v6477_v62 = vld [vmem:[#allocation5 + $0x510] sm:$0xff]  }
 0x47a   :  { %3375 = vmatpush1.bf16.msra.mxu0 %v5702_v3  ;;  %3416 = vmatpush1.bf16.msra.mxu1 %v5704_v4  ;;  %v6482_v3 = vld [vmem:[#allocation5 + $0x598] sm:$0xff]   ;;  %v6483_v4 = vld [vmem:[#allocation5 + $0x560] sm:$0xff]  }
 0x47b   :  { %3376 = vmatprep.subr.bf16.mxu0 %v5707_v5  ;;  %3417 = vmatprep.subr.bf16.mxu1 %v5709_v6  ;;  %v6484_v5 = vld [vmem:[#allocation5 + $0x5e0] sm:$0xff]  }
 0x47c   :  { %v6485_v6 = vld [vmem:[#allocation5 + $0x520] sm:$0xff]  }
 0x47e   :  { %3377 = vmatpush1.bf16.msra.mxu0 %v5706_v12  ;;  %3418 = vmatpush1.bf16.msra.mxu1 %v5708_v13  ;;  %v6490_v12 = vld [vmem:[#allocation5 + $0x5a8] sm:$0xff]   ;;  %v6491_v13 = vld [vmem:[#allocation5 + $0x570] sm:$0xff]  }
 0x47f   :  { %3378 = vmatprep.subr.bf16.mxu0 %v5711_v14  ;;  %3419 = vmatprep.subr.bf16.mxu1 %v5713_v15  ;;  %v6492_v14 = vld [vmem:[#allocation5 + $0x5f0] sm:$0xff]  }
 0x480   :  { %v6493_v15 = vld [vmem:[#allocation5 + $0x530] sm:$0xff]  }
 0x482   :  { %3379 = vmatpush1.bf16.msra.mxu0 %v5710_v19  ;;  %3420 = vmatpush1.bf16.msra.mxu1 %v5712_v20  ;;  %v6498_v19 = vld [vmem:[#allocation5 + $0x5b8] sm:$0xff]   ;;  %v3799_v20 = vld [vmem:[#allocation3 + $0x60] sm:$0xff] }
 0x483   :  { %3380 = vmatprep.subr.bf16.mxu0 %v5715_v21  ;;  %3421 = vmatprep.subr.bf16.mxu1 %v5717_v22  ;;  %v3801_v21 = vld [vmem:[#allocation3 + $0xe0] sm:$0xff]  ;;  %v3800_v22 = vld [vmem:[#allocation3 + $0x68] sm:$0xff] }
 0x484   :  { %v5763_v23 = vcombine.high %v3799_v20, %v3801_v21  ;;  %v5762_v25 = vcombine.low %v3799_v20, %v3801_v21  ;;  %v5764_v26 = vcombine.low %v3800_v22, %v3802_v24 }
 0x486   :  { %3381 = vmatpush1.bf16.msra.mxu0 %v5714_v27  ;;  %3422 = vmatpush1.bf16.msra.mxu1 %v5716_v28  ;;  %v5765_v27 = vcombine.high %v3800_v22, %v3802_v24  ;;  %v3819_v24 = vld [vmem:[#allocation3 + $0x560] sm:$0xff] }
 0x487   :  { %3382 = vmatprep.subr.bf16.mxu0 %v5719_v29  ;;  %3423 = vmatprep.subr.bf16.mxu1 %v5721_v30 }
 0x48a   :  { %3383 = vmatpush1.bf16.msra.mxu0 %v5718_v35  ;;  %3424 = vmatpush1.bf16.msra.mxu1 %v5720_v36 }
 0x48b   :  { %3384 = vmatprep.subr.bf16.mxu0 %v5723_v37  ;;  %3425 = vmatprep.subr.bf16.mxu1 %v5725_v42 }
 0x48e   :  { %3385 = vmatpush1.bf16.msra.mxu0 %v5722_v49  ;;  %3426 = vmatpush1.bf16.msra.mxu1 %v5724_v50 }
 0x48f   :  { %3386 = vmatprep.subr.bf16.mxu0 %v5727_v38  ;;  %3427 = vmatprep.subr.bf16.mxu1 %v5729_v51 }
 0x492   :  { %3387 = vmatpush1.bf16.msra.mxu0 %v5726_v52  ;;  %3428 = vmatpush1.bf16.msra.mxu1 %v5728_v53  ;;  %v3803_v53 = vld [vmem:[#allocation3 + $0x160] sm:$0xff] }
 0x493   :  { %6143 = vmatprep.subr.bf16.mxu0 %v6467_v54  ;;  %6165 = vmatprep.subr.bf16.mxu1 %v6468_v55  ;;  %v3805_v54 = vld [vmem:[#allocation3 + $0x1e0] sm:$0xff] }
 0x495   :  { %3405 = vmatmul.mubr.bf16.vlgmr.msra.gmra.mrb[40].mxu0 %v6865_v39  ;;  %3446 = vmatmul.mubr.bf16.vlgmr.msra.gmra.mrb[40].mxu1 %v6865_v39 }
 0x496   :  { %6144 = vmatpush3.bf16.msra.mxu0 %v6469_v56  ;;  %6166 = vmatpush3.bf16.msra.mxu1 %v6470_v57 }
 0x497   :  { %6145 = vmatprep.subr.bf16.mxu0 %v6471_v58  ;;  %6167 = vmatprep.subr.bf16.mxu1 %v6472_v59  ;;  %v3804_v58 = vld [vmem:[#allocation3 + $0x168] sm:$0xff] }
 0x498   :  { %v3806_v59 = vld [vmem:[#allocation3 + $0x1e8] sm:$0xff] }
 0x49a   :  { %6146 = vmatpush3.bf16.msra.mxu0 %v6473_v41  ;;  %6168 = vmatpush3.bf16.msra.mxu1 %v6474_v43 }
 0x49b   :  { %6147 = vmatprep.subr.bf16.mxu0 %v6475_v60  ;;  %6169 = vmatprep.subr.bf16.mxu1 %v6476_v61  ;;  %v5767_v61 = vcombine.high %v3803_v53, %v3805_v54 }
 0x49e   :  { %6148 = vmatpush3.bf16.msra.mxu0 %v6477_v62  ;;  %6170 = vmatpush3.bf16.msra.mxu1 %v6478_v40  ;;  %v5769_v40 = vcombine.high %v3804_v58, %v3806_v59 }
 0x49f   :  { %6149 = vmatprep.subr.bf16.mxu0 %v6479_v63  ;;  %6171 = vmatprep.subr.bf16.mxu1 %v6480_v1  ;;  %v3807_v63 = vld [vmem:[#allocation3 + $0x260] sm:$0xff] }
 0x4a0   :  { %v3809_v1 = vld [vmem:[#allocation3 + $0x2e0] sm:$0xff] }
 0x4a2   :  { %6150 = vmatpush3.bf16.msra.mxu0 %v6481_v2  ;;  %6172 = vmatpush3.bf16.msra.mxu1 %v6482_v3  ;;  %v3808_v2 = vld [vmem:[#allocation3 + $0x268] sm:$0xff] }
 0x4a3   :  { %6151 = vmatprep.subr.bf16.mxu0 %v6483_v4  ;;  %6173 = vmatprep.subr.bf16.mxu1 %v6484_v5  ;;  %v3810_v3 = vld [vmem:[#allocation3 + $0x2e8] sm:$0xff]  ;;  %v5766_v4 = vcombine.low %v3803_v53, %v3805_v54  ;;  %v5768_v5 = vcombine.low %v3804_v58, %v3806_v59  ;;  %v6501_v58 = vld [vmem:[#allocation5 + $0x600] sm:$0xff]  }
 0x4a4   :  { %v6502_v59 = vld [vmem:[#allocation5 + $0x680] sm:$0xff]  }
 0x4a6   :  { %6152 = vmatpush3.bf16.msra.mxu0 %v6485_v6  ;;  %6174 = vmatpush3.bf16.msra.mxu1 %v6486_v7  ;;  %v5771_v6 = vcombine.high %v3807_v63, %v3809_v1  ;;  %v5773_v7 = vcombine.high %v3808_v2, %v3810_v3 }
 0x4a7   :  { %6153 = vmatprep.subr.bf16.mxu0 %v6487_v8  ;;  %6175 = vmatprep.subr.bf16.mxu1 %v6488_v9  ;;  %v3811_v8 = vld [vmem:[#allocation3 + $0x360] sm:$0xff] }
 0x4a8   :  { %v3813_v9 = vld [vmem:[#allocation3 + $0x3e0] sm:$0xff] }
 0x4a9   :  { %v5774_v20 = vcombine.low %v3811_v8, %v3813_v9 }
 0x4aa   :  { %6154 = vmatpush3.bf16.msra.mxu0 %v6489_v10  ;;  %6176 = vmatpush3.bf16.msra.mxu1 %v6490_v12  ;;  %v3812_v10 = vld [vmem:[#allocation3 + $0x368] sm:$0xff] }
 0x4ab   :  { %6155 = vmatprep.subr.bf16.mxu0 %v6491_v13  ;;  %6177 = vmatprep.subr.bf16.mxu1 %v6492_v14  ;;  %v3814_v12 = vld [vmem:[#allocation3 + $0x3e8] sm:$0xff]  ;;  %v5770_v13 = vcombine.low %v3807_v63, %v3809_v1  ;;  %v5772_v14 = vcombine.low %v3808_v2, %v3810_v3  ;;  %v6510_v63 = vld [vmem:[#allocation5 + $0x690] sm:$0xff]   ;;  %v6511_v1 = vld [vmem:[#allocation5 + $0x658] sm:$0xff]  }
 0x4ac   :  { %v5776_v21 = vcombine.low %v3812_v10, %v3814_v12  ;;  %v6512_v2 = vld [vmem:[#allocation5 + $0x6d8] sm:$0xff]  }
 0x4ad   :  { %v6513_v3 = vld [vmem:[#allocation5 + $0x618] sm:$0xff]  }
 0x4ae   :  { %6156 = vmatpush3.bf16.msra.mxu0 %v6493_v15  ;;  %6178 = vmatpush3.bf16.msra.mxu1 %v6494_v11  ;;  %v5775_v15 = vcombine.high %v3811_v8, %v3813_v9  ;;  %v5777_v11 = vcombine.high %v3812_v10, %v3814_v12  ;;  %v6518_v8 = vld [vmem:[#allocation5 + $0x6a0] sm:$0xff]   ;;  %v6519_v9 = vld [vmem:[#allocation5 + $0x668] sm:$0xff]  }
 0x4af   :  { %6157 = vmatprep.subr.bf16.mxu0 %v6495_v16  ;;  %6179 = vmatprep.subr.bf16.mxu1 %v6496_v17  ;;  %v3815_v16 = vld [vmem:[#allocation3 + $0x460] sm:$0xff]  ;;  %v6520_v10 = vld [vmem:[#allocation5 + $0x6e8] sm:$0xff]  }
 0x4b0   :  { %v3817_v17 = vld [vmem:[#allocation3 + $0x4e0] sm:$0xff]  ;;  %v6521_v12 = vld [vmem:[#allocation5 + $0x628] sm:$0xff]  }
 0x4b1   :  { %v5779_v22 = vcombine.high %v3815_v16, %v3817_v17 }
 0x4b2   :  { %6158 = vmatpush3.bf16.msra.mxu0 %v6497_v18  ;;  %6180 = vmatpush3.bf16.msra.mxu1 %v6498_v19  ;;  %v3816_v18 = vld [vmem:[#allocation3 + $0x468] sm:$0xff] }
 0x4b3   :  { %3991 = vmatprep.subr.bf16.mxu0 %v5763_v23  ;;  %4032 = vmatprep.subr.bf16.mxu1 %v5765_v27  ;;  %v3818_v19 = vld [vmem:[#allocation3 + $0x4e8] sm:$0xff] }
 0x4b4   :  { %v5781_v23 = vcombine.high %v3816_v18, %v3818_v19  ;;  %v3822_v27 = vld [vmem:[#allocation3 + $0x5e8] sm:$0xff] }
 0x548   :  { %v6115_v28 = vpop.f32.mrb[36].mxu0  ;;  %v6137_v29 = vpop.f32.mrb[36].mxu1 }
 0x549   :  { %v6116_v30 = vpop.f32.mrb[37].mxu0  ;;  %v6138_v32 = vpop.f32.mrb[37].mxu1 }
 0x54a   :  { %v6117_v31 = vadd.f32 %v6116_v30, %v6115_v28  ;;  %v6118_v33 = vpop.f32.mrb[38].mxu0  ;;  %v6139_v34 = vadd.f32 %v6138_v32, %v6137_v29  ;;  %v6140_v35 = vpop.f32.mrb[38].mxu1  ;;  %v5778_v28 = vcombine.low %v3815_v16, %v3817_v17  ;;  %v5780_v29 = vcombine.low %v3816_v18, %v3818_v19  ;;  %v3823_v32 = vld [vmem:[#allocation3 + $0x660] sm:$0xff]  ;;  %v6526_v16 = vld [vmem:[#allocation5 + $0x6b0] sm:$0xff]   ;;  %v6527_v17 = vld [vmem:[#allocation5 + $0x678] sm:$0xff]  }
 0x54b   :  { %v6119_v36 = vpop.f32.mrb[39].mxu0  ;;  %v6141_v37 = vpop.f32.mrb[39].mxu1  ;;  %v3825_v33 = vld [vmem:[#allocation3 + $0x6e0] sm:$0xff]  ;;  %v3826_v35 = vld [vmem:[#allocation3 + $0x6e8] sm:$0xff]  ;;  %v6528_v18 = vld [vmem:[#allocation5 + $0x6f8] sm:$0xff]  }
 0x54c   :  { %v3174_v42 = vadd.f32 %v6139_v34, %v6117_v31  ;;  %v3824_v34 = vld [vmem:[#allocation3 + $0x668] sm:$0xff]  ;;  %v6529_v19 = vld [vmem:[#allocation5 + $0x638] sm:$0xff]  }
 0x54e   :  { %v6870_v45 = vadd.f32 %v3174_v42, %v6858_v44  ;;  %v5787_v42 = vcombine.high %v3823_v32, %v3825_v33 }
 0x568   :  { %v3406_v46 = vpop.f32.mrb[40].mxu0  ;;  %v3447_v48 = vpop.f32.mrb[40].mxu1 }
 0x569   :  { %v3454_v47 = vmax.f32 %v3406_v46, 0.0  ;;  %v3408_v49 = vpop.f32.mrb[41].mxu0  ;;  %v3456_v50 = vmax.f32 %v3447_v48, 0.0  ;;  %v3449_v51 = vpop.f32.mrb[41].mxu1  ;;  %v5789_v46 = vcombine.high %v3824_v34, %v3826_v35  ;;  %v3829_v48 = vld [vmem:[#allocation3 + $0x7e0] sm:$0xff] }
 0x56a   :  { %v3455_v38 = vmax.f32 %v3408_v49, 0.0  ;;  %v3410_v52 = vpop.f32.mrb[42].mxu0  ;;  %v3457_v55 = vmax.f32 %v3449_v51, 0.0  ;;  %v3451_v56 = vpop.f32.mrb[42].mxu1  ;;  %v3828_v49 = vld [vmem:[#allocation3 + $0x768] sm:$0xff]  ;;  %v5788_v51 = vcombine.low %v3824_v34, %v3826_v35 }
 0x56b   :  { %v3411_v57 = vpop.f32.mrb[43].mxu0  ;;  %v3452_v43 = vpop.f32.mrb[43].mxu1  ;;  %v3458_v60 = vpack.c.bf16 %v3454_v47, %v3454_v47  ;;  %v3460_v62 = vpack.c.bf16 %v3456_v50, %v3456_v50  ;;  %v3827_v47 = vld [vmem:[#allocation3 + $0x760] sm:$0xff]  ;;  %v3830_v50 = vld [vmem:[#allocation3 + $0x7e8] sm:$0xff] }
 0x56c   :  { %v3459_v41 = vpack.c.bf16 %v3455_v38, %v3455_v38  ;;  %v3461_v44 = vpack.c.bf16 %v3457_v55, %v3457_v55  ;;  %v5786_v38 = vcombine.low %v3823_v32, %v3825_v33  ;;  %v5791_v52 = vcombine.high %v3827_v47, %v3829_v48  ;;  %v6499_v56 = vld [vmem:[#allocation5 + $0x640] sm:$0xff]   ;;  %v6504_v43 = vld [vmem:[#allocation5 + $0x6c8] sm:$0xff]  }
 0x56d   :  { %v5793_v53 = vcombine.high %v3828_v49, %v3830_v50  ;;  %v5790_v54 = vcombine.low %v3827_v47, %v3829_v48  ;;  %v5792_v55 = vcombine.low %v3828_v49, %v3830_v50  ;;  %v6500_v57 = vld [vmem:[#allocation5 + $0x6c0] sm:$0xff]  }
 0x56e   :  { %3750 = vmatprep.mubr.bf16.mxu0 %v3459_v41  ;;  %3790 = vmatprep.mubr.bf16.mxu1 %v3461_v44  ;;  %v6503_v41 = vld [vmem:[#allocation5 + $0x648] sm:$0xff]  }
 0x56f   :  { %3751 = vmatmul.mubr.bf16.vlgmr.msra.gmra.mrb[44].mxu0 %v3458_v60  ;;  %3791 = vmatmul.mubr.bf16.vlgmr.msra.gmra.mrb[44].mxu1 %v3460_v62  ;;  %v6505_v60 = vld [vmem:[#allocation5 + $0x608] sm:$0xff]   ;;  %v6508_v62 = vld [vmem:[#allocation5 + $0x6d0] sm:$0xff]  }
 0x570   :  { %3992 = vmatpush1.bf16.msra.mxu0 %v5762_v25  ;;  %4033 = vmatpush1.bf16.msra.mxu1 %v5764_v26  ;;  %v3821_v25 = vld [vmem:[#allocation3 + $0x5e0] sm:$0xff]  ;;  %v3820_v26 = vld [vmem:[#allocation3 + $0x568] sm:$0xff] }
 0x571   :  { %3993 = vmatprep.subr.bf16.mxu0 %v5767_v61  ;;  %4034 = vmatprep.subr.bf16.mxu1 %v5769_v40  ;;  %v5783_v30 = vcombine.high %v3819_v24, %v3821_v25  ;;  %v5785_v31 = vcombine.high %v3820_v26, %v3822_v27  ;;  %v5782_v36 = vcombine.low %v3819_v24, %v3821_v25  ;;  %v6506_v44 = vld [vmem:[#allocation5 + $0x688] sm:$0xff]   ;;  %v6507_v61 = vld [vmem:[#allocation5 + $0x650] sm:$0xff]   ;;  %v4421_v25 = vld [vmem:[#allocation3 + $0xf8] sm:$0xff] }
 0x572   :  { %4023 = vmatprep.mubr.bf16.mxu0 %v6708_v0  ;;  %4064 = vmatprep.mubr.bf16.mxu1 %v6708_v0  ;;  %v5784_v37 = vcombine.low %v3820_v26, %v3822_v27  ;;  %v6509_v40 = vld [vmem:[#allocation5 + $0x610] sm:$0xff]  }
 0x574   :  { %3994 = vmatpush1.bf16.msra.mxu0 %v5766_v4  ;;  %4035 = vmatpush1.bf16.msra.mxu1 %v5768_v5  ;;  %v6514_v4 = vld [vmem:[#allocation5 + $0x698] sm:$0xff]   ;;  %v6515_v5 = vld [vmem:[#allocation5 + $0x660] sm:$0xff]  }
 0x575   :  { %3995 = vmatprep.subr.bf16.mxu0 %v5771_v6  ;;  %4036 = vmatprep.subr.bf16.mxu1 %v5773_v7  ;;  %v6516_v6 = vld [vmem:[#allocation5 + $0x6e0] sm:$0xff]  }
 0x576   :  { %v6517_v7 = vld [vmem:[#allocation5 + $0x620] sm:$0xff]  }
 0x578   :  { %3996 = vmatpush1.bf16.msra.mxu0 %v5770_v13  ;;  %4037 = vmatpush1.bf16.msra.mxu1 %v5772_v14  ;;  %v6522_v13 = vld [vmem:[#allocation5 + $0x6a8] sm:$0xff]   ;;  %v6523_v14 = vld [vmem:[#allocation5 + $0x670] sm:$0xff]  }
 0x579   :  { %3997 = vmatprep.subr.bf16.mxu0 %v5775_v15  ;;  %4038 = vmatprep.subr.bf16.mxu1 %v5777_v11  ;;  %v6524_v15 = vld [vmem:[#allocation5 + $0x6f0] sm:$0xff]  }
 0x57a   :  { %v6525_v11 = vld [vmem:[#allocation5 + $0x630] sm:$0xff]  }
 0x57c   :  { %3998 = vmatpush1.bf16.msra.mxu0 %v5774_v20  ;;  %4039 = vmatpush1.bf16.msra.mxu1 %v5776_v21  ;;  %v6530_v20 = vld [vmem:[#allocation5 + $0x6b8] sm:$0xff]   ;;  %v4418_v21 = vld [vmem:[#allocation3 + $0x70] sm:$0xff] }
 0x57d   :  { %3999 = vmatprep.subr.bf16.mxu0 %v5779_v22  ;;  %4040 = vmatprep.subr.bf16.mxu1 %v5781_v23  ;;  %v4420_v22 = vld [vmem:[#allocation3 + $0xf0] sm:$0xff]  ;;  %v4419_v23 = vld [vmem:[#allocation3 + $0x78] sm:$0xff] }
 0x57e   :  { %v5827_v24 = vcombine.high %v4418_v21, %v4420_v22  ;;  %v5826_v26 = vcombine.low %v4418_v21, %v4420_v22  ;;  %v5828_v27 = vcombine.low %v4419_v23, %v4421_v25 }
 0x580   :  { %4000 = vmatpush1.bf16.msra.mxu0 %v5778_v28  ;;  %4041 = vmatpush1.bf16.msra.mxu1 %v5780_v29  ;;  %v5829_v28 = vcombine.high %v4419_v23, %v4421_v25  ;;  %v4438_v25 = vld [vmem:[#allocation3 + $0x570] sm:$0xff] }
 0x581   :  { %4001 = vmatprep.subr.bf16.mxu0 %v5783_v30  ;;  %4042 = vmatprep.subr.bf16.mxu1 %v5785_v31 }
 0x584   :  { %4002 = vmatpush1.bf16.msra.mxu0 %v5782_v36  ;;  %4043 = vmatpush1.bf16.msra.mxu1 %v5784_v37 }
 0x585   :  { %4003 = vmatprep.subr.bf16.mxu0 %v5787_v42  ;;  %4044 = vmatprep.subr.bf16.mxu1 %v5789_v46 }
 0x588   :  { %4004 = vmatpush1.bf16.msra.mxu0 %v5786_v38  ;;  %4045 = vmatpush1.bf16.msra.mxu1 %v5788_v51 }
 0x589   :  { %4005 = vmatprep.subr.bf16.mxu0 %v5791_v52  ;;  %4046 = vmatprep.subr.bf16.mxu1 %v5793_v53 }
 0x58c   :  { %4006 = vmatpush1.bf16.msra.mxu0 %v5790_v54  ;;  %4047 = vmatpush1.bf16.msra.mxu1 %v5792_v55  ;;  %v4422_v55 = vld [vmem:[#allocation3 + $0x170] sm:$0xff] }
 0x58d   :  { %6187 = vmatprep.subr.bf16.mxu0 %v6499_v56  ;;  %6209 = vmatprep.subr.bf16.mxu1 %v6500_v57  ;;  %v4424_v56 = vld [vmem:[#allocation3 + $0x1f0] sm:$0xff] }
 0x58f   :  { %4024 = vmatmul.mubr.bf16.vlgmr.msra.gmra.mrb[48].mxu0 %v6865_v39  ;;  %4065 = vmatmul.mubr.bf16.vlgmr.msra.gmra.mrb[48].mxu1 %v6865_v39 }
 0x590   :  { %6188 = vmatpush3.bf16.msra.mxu0 %v6501_v58  ;;  %6210 = vmatpush3.bf16.msra.mxu1 %v6502_v59 }
 0x591   :  { %6189 = vmatprep.subr.bf16.mxu0 %v6503_v41  ;;  %6211 = vmatprep.subr.bf16.mxu1 %v6504_v43  ;;  %v4423_v41 = vld [vmem:[#allocation3 + $0x178] sm:$0xff] }
 0x592   :  { %v4425_v43 = vld [vmem:[#allocation3 + $0x1f8] sm:$0xff] }
 0x594   :  { %6190 = vmatpush3.bf16.msra.mxu0 %v6505_v60  ;;  %6212 = vmatpush3.bf16.msra.mxu1 %v6506_v44 }
 0x595   :  { %6191 = vmatprep.subr.bf16.mxu0 %v6507_v61  ;;  %6213 = vmatprep.subr.bf16.mxu1 %v6508_v62  ;;  %v5831_v62 = vcombine.high %v4422_v55, %v4424_v56 }
 0x598   :  { %6192 = vmatpush3.bf16.msra.mxu0 %v6509_v40  ;;  %6214 = vmatpush3.bf16.msra.mxu1 %v6510_v63  ;;  %v5833_v63 = vcombine.high %v4423_v41, %v4425_v43 }
 0x599   :  { %6193 = vmatprep.subr.bf16.mxu0 %v6511_v1  ;;  %6215 = vmatprep.subr.bf16.mxu1 %v6512_v2  ;;  %v4426_v1 = vld [vmem:[#allocation3 + $0x270] sm:$0xff] }
 0x59a   :  { %v4428_v2 = vld [vmem:[#allocation3 + $0x2f0] sm:$0xff] }
 0x59c   :  { %6194 = vmatpush3.bf16.msra.mxu0 %v6513_v3  ;;  %6216 = vmatpush3.bf16.msra.mxu1 %v6514_v4  ;;  %v4427_v3 = vld [vmem:[#allocation3 + $0x278] sm:$0xff] }
 0x59d   :  { %6195 = vmatprep.subr.bf16.mxu0 %v6515_v5  ;;  %6217 = vmatprep.subr.bf16.mxu1 %v6516_v6  ;;  %v4429_v4 = vld [vmem:[#allocation3 + $0x2f8] sm:$0xff]  ;;  %v5830_v5 = vcombine.low %v4422_v55, %v4424_v56  ;;  %v5832_v6 = vcombine.low %v4423_v41, %v4425_v43  ;;  %v6533_v41 = vld [vmem:[#allocation5 + $0x700] sm:$0xff]  }
 0x59e   :  { %v6534_v43 = vld [vmem:[#allocation5 + $0x780] sm:$0xff]  }
 0x5a0   :  { %6196 = vmatpush3.bf16.msra.mxu0 %v6517_v7  ;;  %6218 = vmatpush3.bf16.msra.mxu1 %v6518_v8  ;;  %v5835_v7 = vcombine.high %v4426_v1, %v4428_v2  ;;  %v5837_v8 = vcombine.high %v4427_v3, %v4429_v4 }
 0x5a1   :  { %6197 = vmatprep.subr.bf16.mxu0 %v6519_v9  ;;  %6219 = vmatprep.subr.bf16.mxu1 %v6520_v10  ;;  %v4430_v9 = vld [vmem:[#allocation3 + $0x370] sm:$0xff] }
 0x5a2   :  { %v4432_v10 = vld [vmem:[#allocation3 + $0x3f0] sm:$0xff] }
 0x5a3   :  { %v5838_v21 = vcombine.low %v4430_v9, %v4432_v10 }
 0x5a4   :  { %6198 = vmatpush3.bf16.msra.mxu0 %v6521_v12  ;;  %6220 = vmatpush3.bf16.msra.mxu1 %v6522_v13  ;;  %v4431_v12 = vld [vmem:[#allocation3 + $0x378] sm:$0xff] }
 0x5a5   :  { %6199 = vmatprep.subr.bf16.mxu0 %v6523_v14  ;;  %6221 = vmatprep.subr.bf16.mxu1 %v6524_v15  ;;  %v4433_v13 = vld [vmem:[#allocation3 + $0x3f8] sm:$0xff]  ;;  %v5834_v14 = vcombine.low %v4426_v1, %v4428_v2  ;;  %v5836_v15 = vcombine.low %v4427_v3, %v4429_v4 }
 0x5a6   :  { %v5840_v22 = vcombine.low %v4431_v12, %v4433_v13  ;;  %v6543_v1 = vld [vmem:[#allocation5 + $0x758] sm:$0xff]  }
 0x5a7   :  { %v6544_v2 = vld [vmem:[#allocation5 + $0x7d8] sm:$0xff]  }
 0x5a8   :  { %6200 = vmatpush3.bf16.msra.mxu0 %v6525_v11  ;;  %6222 = vmatpush3.bf16.msra.mxu1 %v6526_v16  ;;  %v5839_v11 = vcombine.high %v4430_v9, %v4432_v10  ;;  %v5841_v16 = vcombine.high %v4431_v12, %v4433_v13  ;;  %v6545_v3 = vld [vmem:[#allocation5 + $0x718] sm:$0xff]   ;;  %v6551_v9 = vld [vmem:[#allocation5 + $0x768] sm:$0xff]  }
 0x5a9   :  { %6201 = vmatprep.subr.bf16.mxu0 %v6527_v17  ;;  %6223 = vmatprep.subr.bf16.mxu1 %v6528_v18  ;;  %v4434_v17 = vld [vmem:[#allocation3 + $0x470] sm:$0xff]  ;;  %v6546_v4 = vld [vmem:[#allocation5 + $0x798] sm:$0xff]   ;;  %v6552_v10 = vld [vmem:[#allocation5 + $0x7e8] sm:$0xff]  }
 0x5aa   :  { %v4436_v18 = vld [vmem:[#allocation3 + $0x4f0] sm:$0xff]  ;;  %v6553_v12 = vld [vmem:[#allocation5 + $0x728] sm:$0xff]  }
 0x5ab   :  { %v5843_v23 = vcombine.high %v4434_v17, %v4436_v18  ;;  %v6554_v13 = vld [vmem:[#allocation5 + $0x7a8] sm:$0xff]  }
 0x5ac   :  { %6202 = vmatpush3.bf16.msra.mxu0 %v6529_v19  ;;  %6224 = vmatpush3.bf16.msra.mxu1 %v6530_v20  ;;  %v4435_v19 = vld [vmem:[#allocation3 + $0x478] sm:$0xff] }
 0x5ad   :  { %4610 = vmatprep.subr.bf16.mxu0 %v5827_v24  ;;  %4651 = vmatprep.subr.bf16.mxu1 %v5829_v28  ;;  %v4437_v20 = vld [vmem:[#allocation3 + $0x4f8] sm:$0xff] }
 0x5ae   :  { %v5845_v24 = vcombine.high %v4435_v19, %v4437_v20  ;;  %v4441_v28 = vld [vmem:[#allocation3 + $0x5f8] sm:$0xff] }
 0x642   :  { %v6159_v29 = vpop.f32.mrb[44].mxu0  ;;  %v6181_v30 = vpop.f32.mrb[44].mxu1 }
 0x643   :  { %v6160_v31 = vpop.f32.mrb[45].mxu0  ;;  %v6182_v33 = vpop.f32.mrb[45].mxu1 }
 0x644   :  { %v6161_v32 = vadd.f32 %v6160_v31, %v6159_v29  ;;  %v6162_v34 = vpop.f32.mrb[46].mxu0  ;;  %v6183_v35 = vadd.f32 %v6182_v33, %v6181_v30  ;;  %v6184_v36 = vpop.f32.mrb[46].mxu1  ;;  %v5842_v29 = vcombine.low %v4434_v17, %v4436_v18  ;;  %v5844_v30 = vcombine.low %v4435_v19, %v4437_v20  ;;  %v4442_v33 = vld [vmem:[#allocation3 + $0x670] sm:$0xff]  ;;  %v6559_v17 = vld [vmem:[#allocation5 + $0x778] sm:$0xff]  }
 0x645   :  { %v6163_v37 = vpop.f32.mrb[47].mxu0  ;;  %v6185_v42 = vpop.f32.mrb[47].mxu1  ;;  %v4444_v34 = vld [vmem:[#allocation3 + $0x6f0] sm:$0xff]  ;;  %v4445_v36 = vld [vmem:[#allocation3 + $0x6f8] sm:$0xff] }
 0x646   :  { %v3793_v46 = vadd.f32 %v6183_v35, %v6161_v32  ;;  %v4443_v35 = vld [vmem:[#allocation3 + $0x678] sm:$0xff] }
 0x647   :  { %v6560_v18 = vld [vmem:[#allocation5 + $0x7f8] sm:$0xff]  }
 0x648   :  { %v6877_v47 = vadd.f32 %v3793_v46, %v6870_v45  ;;  %v5851_v46 = vcombine.high %v4442_v33, %v4444_v34  ;;  %v6561_v19 = vld [vmem:[#allocation5 + $0x738] sm:$0xff]  }
 0x649   :  { %v6562_v20 = vld [vmem:[#allocation5 + $0x7b8] sm:$0xff]  }
 0x662   :  { %v4025_v48 = vpop.f32.mrb[48].mxu0  ;;  %v4066_v50 = vpop.f32.mrb[48].mxu1 }
 0x663   :  { %v4073_v49 = vmax.f32 %v4025_v48, 0.0  ;;  %v4027_v38 = vpop.f32.mrb[49].mxu0  ;;  %v4075_v51 = vmax.f32 %v4066_v50, 0.0  ;;  %v4068_v53 = vpop.f32.mrb[49].mxu1  ;;  %v5853_v48 = vcombine.high %v4443_v35, %v4445_v36  ;;  %v4448_v50 = vld [vmem:[#allocation3 + $0x7f0] sm:$0xff] }
 0x664   :  { %v4074_v52 = vmax.f32 %v4027_v38, 0.0  ;;  %v4029_v54 = vpop.f32.mrb[50].mxu0  ;;  %v4076_v57 = vmax.f32 %v4068_v53, 0.0  ;;  %v4070_v58 = vpop.f32.mrb[50].mxu1  ;;  %v4447_v38 = vld [vmem:[#allocation3 + $0x778] sm:$0xff]  ;;  %v5852_v53 = vcombine.low %v4443_v35, %v4445_v36 }
 0x665   :  { %v4030_v59 = vpop.f32.mrb[51].mxu0  ;;  %v4071_v44 = vpop.f32.mrb[51].mxu1  ;;  %v4077_v61 = vpack.c.bf16 %v4073_v49, %v4073_v49  ;;  %v4079_v40 = vpack.c.bf16 %v4075_v51, %v4075_v51  ;;  %v4446_v49 = vld [vmem:[#allocation3 + $0x770] sm:$0xff]  ;;  %v4449_v51 = vld [vmem:[#allocation3 + $0x7f8] sm:$0xff]  ;;  %v6531_v58 = vld [vmem:[#allocation5 + $0x740] sm:$0xff]  }
 0x666   :  { %v4078_v60 = vpack.c.bf16 %v4074_v52, %v4074_v52  ;;  %v4080_v45 = vpack.c.bf16 %v4076_v57, %v4076_v57  ;;  %v5850_v52 = vcombine.low %v4442_v33, %v4444_v34  ;;  %v5855_v54 = vcombine.high %v4446_v49, %v4448_v50  ;;  %v6532_v59 = vld [vmem:[#allocation5 + $0x7c0] sm:$0xff]   ;;  %v6536_v44 = vld [vmem:[#allocation5 + $0x7c8] sm:$0xff]  }
 0x667   :  { %v5857_v55 = vcombine.high %v4447_v38, %v4449_v51  ;;  %v5854_v56 = vcombine.low %v4446_v49, %v4448_v50  ;;  %v5856_v57 = vcombine.low %v4447_v38, %v4449_v51 }
 0x668   :  { %4369 = vmatprep.mubr.bf16.mxu0 %v4078_v60  ;;  %4409 = vmatprep.mubr.bf16.mxu1 %v4080_v45  ;;  %v6535_v60 = vld [vmem:[#allocation5 + $0x748] sm:$0xff]  }
 0x669   :  { %4370 = vmatmul.mubr.bf16.vlgmr.msra.gmra.mrb[52].mxu0 %v4077_v61  ;;  %4410 = vmatmul.mubr.bf16.vlgmr.msra.gmra.mrb[52].mxu1 %v4079_v40  ;;  %v6537_v61 = vld [vmem:[#allocation5 + $0x708] sm:$0xff]   ;;  %v6540_v40 = vld [vmem:[#allocation5 + $0x7d0] sm:$0xff]  }
 0x66a   :  { %4611 = vmatpush1.bf16.msra.mxu0 %v5826_v26  ;;  %4652 = vmatpush1.bf16.msra.mxu1 %v5828_v27  ;;  %v4440_v26 = vld [vmem:[#allocation3 + $0x5f0] sm:$0xff]  ;;  %v4439_v27 = vld [vmem:[#allocation3 + $0x578] sm:$0xff]  ;;  %v6538_v45 = vld [vmem:[#allocation5 + $0x788] sm:$0xff]  }
 0x66b   :  { %4612 = vmatprep.subr.bf16.mxu0 %v5831_v62  ;;  %4653 = vmatprep.subr.bf16.mxu1 %v5833_v63  ;;  %v5847_v31 = vcombine.high %v4438_v25, %v4440_v26  ;;  %v5849_v32 = vcombine.high %v4439_v27, %v4441_v28  ;;  %v5846_v37 = vcombine.low %v4438_v25, %v4440_v26  ;;  %v6539_v62 = vld [vmem:[#allocation5 + $0x750] sm:$0xff]  }
 0x66c   :  { %4642 = vmatprep.mubr.bf16.mxu0 %v6708_v0  ;;  %4683 = vmatprep.mubr.bf16.mxu1 %v6708_v0  ;;  %v5848_v42 = vcombine.low %v4439_v27, %v4441_v28  ;;  %v6541_v63 = vld [vmem:[#allocation5 + $0x710] sm:$0xff]  }
 0x66e   :  { %4613 = vmatpush1.bf16.msra.mxu0 %v5830_v5  ;;  %4654 = vmatpush1.bf16.msra.mxu1 %v5832_v6  ;;  %v6547_v5 = vld [vmem:[#allocation5 + $0x760] sm:$0xff]  }
 0x66f   :  { %4614 = vmatprep.subr.bf16.mxu0 %v5835_v7  ;;  %4655 = vmatprep.subr.bf16.mxu1 %v5837_v8  ;;  %v6548_v6 = vld [vmem:[#allocation5 + $0x7e0] sm:$0xff]  }
 0x670   :  { %v6549_v7 = vld [vmem:[#allocation5 + $0x720] sm:$0xff]  }
 0x671   :  { %v6550_v8 = vld [vmem:[#allocation5 + $0x7a0] sm:$0xff]  }
 0x672   :  { %4615 = vmatpush1.bf16.msra.mxu0 %v5834_v14  ;;  %4656 = vmatpush1.bf16.msra.mxu1 %v5836_v15  ;;  %v6555_v14 = vld [vmem:[#allocation5 + $0x770] sm:$0xff]  }
 0x673   :  { %4616 = vmatprep.subr.bf16.mxu0 %v5839_v11  ;;  %4657 = vmatprep.subr.bf16.mxu1 %v5841_v16  ;;  %v6556_v15 = vld [vmem:[#allocation5 + $0x7f0] sm:$0xff]  }
 0x674   :  { %v6557_v11 = vld [vmem:[#allocation5 + $0x730] sm:$0xff]  }
 0x675   :  { %v6558_v16 = vld [vmem:[#allocation5 + $0x7b0] sm:$0xff]  }
 0x676   :  { %4617 = vmatpush1.bf16.msra.mxu0 %v5838_v21  ;;  %4658 = vmatpush1.bf16.msra.mxu1 %v5840_v22  ;;  %v6565_v21 = vld [vmem:[#allocation7 + $0x4] ss:$8 sps:$4 sm:$0xff]  }
 0x677   :  { %4618 = vmatprep.subr.bf16.mxu0 %v5843_v23  ;;  %4659 = vmatprep.subr.bf16.mxu1 %v5845_v24 }
 0x67a   :  { %4619 = vmatpush1.bf16.msra.mxu0 %v5842_v29  ;;  %4660 = vmatpush1.bf16.msra.mxu1 %v5844_v30 }
 0x67b   :  { %4620 = vmatprep.subr.bf16.mxu0 %v5847_v31  ;;  %4661 = vmatprep.subr.bf16.mxu1 %v5849_v32 }
 0x67e   :  { %4621 = vmatpush1.bf16.msra.mxu0 %v5846_v37  ;;  %4662 = vmatpush1.bf16.msra.mxu1 %v5848_v42 }
 0x67f   :  { %4622 = vmatprep.subr.bf16.mxu0 %v5851_v46  ;;  %4663 = vmatprep.subr.bf16.mxu1 %v5853_v48 }
 0x682   :  { %4623 = vmatpush1.bf16.msra.mxu0 %v5850_v52  ;;  %4664 = vmatpush1.bf16.msra.mxu1 %v5852_v53 }
 0x683   :  { %4624 = vmatprep.subr.bf16.mxu0 %v5855_v54  ;;  %4665 = vmatprep.subr.bf16.mxu1 %v5857_v55  ;;  %v6563_v54 = vld [vmem:[#allocation7] ss:$8 sps:$4 sm:$0xff]  }
 0x686   :  { %4625 = vmatpush1.bf16.msra.mxu0 %v5854_v56  ;;  %4666 = vmatpush1.bf16.msra.mxu1 %v5856_v57  ;;  %v6568_v57 = vld [vmem:[#allocation7 + $0x14] ss:$8 sps:$4 sm:$0xff]  }
 0x687   :  { %6231 = vmatprep.subr.bf16.mxu0 %v6531_v58  ;;  %6253 = vmatprep.subr.bf16.mxu1 %v6532_v59  ;;  %v6571_v59 = vld [vmem:[#allocation7 + $0x24] ss:$8 sps:$4 sm:$0xff]  }
 0x689   :  { %4643 = vmatmul.mubr.bf16.vlgmr.msra.gmra.mrb[56].mxu0 %v6865_v39  ;;  %4684 = vmatmul.mubr.bf16.vlgmr.msra.gmra.mrb[56].mxu1 %v6865_v39  ;;  %v6542_v39 = vld [vmem:[#allocation5 + $0x790] sm:$0xff]  }
 0x68a   :  { %6232 = vmatpush3.bf16.msra.mxu0 %v6533_v41  ;;  %6254 = vmatpush3.bf16.msra.mxu1 %v6534_v43  ;;  %v6569_v41 = vld [vmem:[#allocation7 + $0x20] ss:$8 sps:$4 sm:$0xff]   ;;  %v6574_v43 = vld [vmem:[#allocation7 + $0x34] ss:$8 sps:$4 sm:$0xff]  }
 0x68b   :  { %6233 = vmatprep.subr.bf16.mxu0 %v6535_v60  ;;  %6255 = vmatprep.subr.bf16.mxu1 %v6536_v44  ;;  %v6572_v60 = vld [vmem:[#allocation7 + $0x30] ss:$8 sps:$4 sm:$0xff]   ;;  %v6577_v44 = vld [vmem:[#allocation7 + $0x44] ss:$8 sps:$4 sm:$0xff]  }
 0x68e   :  { %6234 = vmatpush3.bf16.msra.mxu0 %v6537_v61  ;;  %6256 = vmatpush3.bf16.msra.mxu1 %v6538_v45  ;;  %v6575_v61 = vld [vmem:[#allocation7 + $0x40] ss:$8 sps:$4 sm:$0xff]   ;;  %v6580_v45 = vld [vmem:[#allocation7 + $0x54] ss:$8 sps:$4 sm:$0xff]  }
 0x68f   :  { %6235 = vmatprep.subr.bf16.mxu0 %v6539_v62  ;;  %6257 = vmatprep.subr.bf16.mxu1 %v6540_v40  ;;  %v6578_v62 = vld [vmem:[#allocation7 + $0x50] ss:$8 sps:$4 sm:$0xff]   ;;  %v6583_v40 = vld [vmem:[#allocation7 + $0x64] ss:$8 sps:$4 sm:$0xff]  }
 0x692   :  { %6236 = vmatpush3.bf16.msra.mxu0 %v6541_v63  ;;  %6258 = vmatpush3.bf16.msra.mxu1 %v6542_v39  ;;  %v6581_v63 = vld [vmem:[#allocation7 + $0x60] ss:$8 sps:$4 sm:$0xff]   ;;  %v6584_v39 = vld [vmem:[#allocation7 + $0x70] ss:$8 sps:$4 sm:$0xff]  }
 0x693   :  { %6237 = vmatprep.subr.bf16.mxu0 %v6543_v1  ;;  %6259 = vmatprep.subr.bf16.mxu1 %v6544_v2  ;;  %v6587_v1 = vld [vmem:[#allocation8 + $0x40] sm:$0xff]  }
 0x694   :  { %v6588_v2 = vld [vmem:[#allocation8] sm:$0xff]  }
 0x696   :  { %6238 = vmatpush3.bf16.msra.mxu0 %v6545_v3  ;;  %6260 = vmatpush3.bf16.msra.mxu1 %v6546_v4  ;;  %v6589_v3 = vld [vmem:[#allocation8 + $0x48] sm:$0xff]  }
 0x697   :  { %6239 = vmatprep.subr.bf16.mxu0 %v6547_v5  ;;  %6261 = vmatprep.subr.bf16.mxu1 %v6548_v6  ;;  %v6590_v4 = vld [vmem:[#allocation8 + $0x8] sm:$0xff]   ;;  %v6591_v5 = vld [vmem:[#allocation8 + $0x50] sm:$0xff]  }
 0x698   :  { %v6592_v6 = vld [vmem:[#allocation8 + $0x10] sm:$0xff]  }
 0x69a   :  { %6240 = vmatpush3.bf16.msra.mxu0 %v6549_v7  ;;  %6262 = vmatpush3.bf16.msra.mxu1 %v6550_v8  ;;  %v6593_v7 = vld [vmem:[#allocation8 + $0x58] sm:$0xff]  }
 0x69b   :  { %6241 = vmatprep.subr.bf16.mxu0 %v6551_v9  ;;  %6263 = vmatprep.subr.bf16.mxu1 %v6552_v10  ;;  %v6594_v8 = vld [vmem:[#allocation8 + $0x18] sm:$0xff]   ;;  %v6595_v9 = vld [vmem:[#allocation8 + $0x60] sm:$0xff]  }
 0x69c   :  { %v6596_v10 = vld [vmem:[#allocation8 + $0x20] sm:$0xff]  }
 0x69e   :  { %6242 = vmatpush3.bf16.msra.mxu0 %v6553_v12  ;;  %6264 = vmatpush3.bf16.msra.mxu1 %v6554_v13  ;;  %v6597_v12 = vld [vmem:[#allocation8 + $0x68] sm:$0xff]  }
 0x69f   :  { %6243 = vmatprep.subr.bf16.mxu0 %v6555_v14  ;;  %6265 = vmatprep.subr.bf16.mxu1 %v6556_v15  ;;  %v6598_v13 = vld [vmem:[#allocation8 + $0x28] sm:$0xff]  }
 0x6a2   :  { %6244 = vmatpush3.bf16.msra.mxu0 %v6557_v11  ;;  %6266 = vmatpush3.bf16.msra.mxu1 %v6558_v16 }
 0x6a3   :  { %6245 = vmatprep.subr.bf16.mxu0 %v6559_v17  ;;  %6267 = vmatprep.subr.bf16.mxu1 %v6560_v18 }
 0x6a6   :  { %6246 = vmatpush3.bf16.msra.mxu0 %v6561_v19  ;;  %6268 = vmatpush3.bf16.msra.mxu1 %v6562_v20 }
 0x6a7   :  { %5150 = vmatprep.subr.bf16.mxu0 %v6565_v21  ;;  %6275 = vmatprep.subr.bf16.mxu1 %v6587_v1 }
 0x73c   :  { %v6203_v22 = vpop.f32.mrb[52].mxu0  ;;  %v6225_v23 = vpop.f32.mrb[52].mxu1 }
 0x73d   :  { %v6204_v24 = vpop.f32.mrb[53].mxu0  ;;  %v6226_v26 = vpop.f32.mrb[53].mxu1 }
 0x73e   :  { %v6205_v25 = vadd.f32 %v6204_v24, %v6203_v22  ;;  %v6206_v27 = vpop.f32.mrb[54].mxu0  ;;  %v6227_v28 = vadd.f32 %v6226_v26, %v6225_v23  ;;  %v6228_v29 = vpop.f32.mrb[54].mxu1  ;;  %v5038_v24 = vstv %s6903_s3 }
 0x73f   :  { %v6207_v30 = vpop.f32.mrb[55].mxu0  ;;  %v6229_v31 = vpop.f32.mrb[55].mxu1  ;;  %v6599_v29 = vld [vmem:[#allocation8 + $0x70] sm:$0xff]  }
 0x740   :  { %v4412_v32 = vadd.f32 %v6227_v28, %v6205_v25  ;;  %v6600_v30 = vld [vmem:[#allocation8 + $0x30] sm:$0xff]   ;;  %v6601_v31 = vld [vmem:[#allocation8 + $0x78] sm:$0xff]  }
 0x742   :  { %v6884_v33 = vadd.f32 %v4412_v32, %v6877_v47  ;;  %v6566_v47 = vld [vmem:[#allocation7 + $0x10] ss:$8 sps:$4 sm:$0xff]  }
 0x743   :  { %v6602_v32 = vld [vmem:[#allocation8 + $0x38] sm:$0xff]  }
 0x75c   :  { %v4644_v34 = vpop.f32.mrb[56].mxu0  ;;  %v4685_v36 = vpop.f32.mrb[56].mxu1 }
 0x75d   :  { %v4692_v35 = vmax.f32 %v4644_v34, 0.0  ;;  %v4646_v37 = vpop.f32.mrb[57].mxu0  ;;  %v4694_v42 = vmax.f32 %v4685_v36, 0.0  ;;  %v4687_v48 = vpop.f32.mrb[57].mxu1  ;;  %v5060_v34 = vlaneseq }
 0x75e   :  { %v4693_v46 = vmax.f32 %v4646_v37, 0.0  ;;  %v4648_v49 = vpop.f32.mrb[58].mxu0  ;;  %v4695_v50 = vmax.f32 %v4687_v48, 0.0  ;;  %v4689_v38 = vpop.f32.mrb[58].mxu1  ;;  %v5058_v37 = vld [vmem:[%s6905_s5] sm:$0x3] }
 0x75f   :  { %v4649_v51 = vpop.f32.mrb[59].mxu0  ;;  %v4690_v53 = vpop.f32.mrb[59].mxu1  ;;  %v4696_v55 = vpack.c.bf16 %v4692_v35, %v4692_v35  ;;  %v4698_v58 = vpack.c.bf16 %v4694_v42, %v4694_v42  ;;  %v5061_v35 = vshrl.u32 %v5060_v34, 7 }
 0x760   :  { %v4697_v52 = vpack.c.bf16 %v4693_v46, %v4693_v46  ;;  %v4699_v56 = vpack.c.bf16 %v4695_v50, %v4695_v50 }
 0x761   :  { %v5062_v36 = vsub.s32 0, %v5061_v35 }
 0x762   :  { %4988 = vmatprep.mubr.bf16.mxu0 %v4697_v52  ;;  %5028 = vmatprep.mubr.bf16.mxu1 %v4699_v56 }
 0x763   :  { %4989 = vmatmul.mubr.bf16.vlgmr.msra.gmra.mrb[60].mxu0 %v4696_v55  ;;  %5029 = vmatmul.mubr.bf16.vlgmr.msra.gmra.mrb[60].mxu1 %v4698_v58  ;;  %v5063_v42 = vrot.slane %v5058_v37, %v5062_v36  ;;  %v5906_v58 = vld [vmem:[%s6907_s7] ss:$0 sm:$0xff] }
 0x764   :  { %5151 = vmatpush1.bf16.msra.mxu0 %v6563_v54  ;;  %5182 = vmatprep.mubr.bf16.mxu0 %v6708_v0  ;;  %v6586_v0 = vld [vmem:[#allocation7 + $0x74] ss:$8 sps:$4 sm:$0xff]  }
 0x765   :  { %5152 = vmatprep.subr.bf16.mxu0 %v6568_v57  ;;  %6276 = vmatpush3.bf16.msra.mxu1 %v6588_v2 }
 0x766   :  { %6277 = vmatprep.subr.bf16.mxu1 %v6589_v3 }
 0x768   :  { %5153 = vmatpush1.bf16.msra.mxu0 %v6566_v47 }
 0x769   :  { %5154 = vmatprep.subr.bf16.mxu0 %v6571_v59  ;;  %6278 = vmatpush3.bf16.msra.mxu1 %v6590_v4 }
 0x76a   :  { %6279 = vmatprep.subr.bf16.mxu1 %v6591_v5 }
 0x76c   :  { %5155 = vmatpush1.bf16.msra.mxu0 %v6569_v41 }
 0x76d   :  { %5156 = vmatprep.subr.bf16.mxu0 %v6574_v43  ;;  %6280 = vmatpush3.bf16.msra.mxu1 %v6592_v6 }
 0x76e   :  { %6281 = vmatprep.subr.bf16.mxu1 %v6593_v7 }
 0x770   :  { %5157 = vmatpush1.bf16.msra.mxu0 %v6572_v60 }
 0x771   :  { %5158 = vmatprep.subr.bf16.mxu0 %v6577_v44  ;;  %6282 = vmatpush3.bf16.msra.mxu1 %v6594_v8 }
 0x772   :  { %6283 = vmatprep.subr.bf16.mxu1 %v6595_v9 }
 0x774   :  { %5159 = vmatpush1.bf16.msra.mxu0 %v6575_v61 }
 0x775   :  { %5160 = vmatprep.subr.bf16.mxu0 %v6580_v45  ;;  %6284 = vmatpush3.bf16.msra.mxu1 %v6596_v10 }
 0x776   :  { %6285 = vmatprep.subr.bf16.mxu1 %v6597_v12 }
 0x778   :  { %5161 = vmatpush1.bf16.msra.mxu0 %v6578_v62 }
 0x779   :  { %5162 = vmatprep.subr.bf16.mxu0 %v6583_v40  ;;  %6286 = vmatpush3.bf16.msra.mxu1 %v6598_v13 }
 0x77a   :  { %6287 = vmatprep.subr.bf16.mxu1 %v6599_v29 }
 0x77c   :  { %5163 = vmatpush1.bf16.msra.mxu0 %v6581_v63 }
 0x77d   :  { %5164 = vmatprep.subr.bf16.mxu0 %v6586_v0  ;;  %6288 = vmatpush3.bf16.msra.mxu1 %v6600_v30 }
 0x77e   :  { %6289 = vmatprep.subr.bf16.mxu1 %v6601_v31 }
 0x780   :  { %5165 = vmatpush1.bf16.msra.mxu0 %v6584_v39 }
 0x781   :  { %6290 = vmatpush3.bf16.msra.mxu1 %v6602_v32 }
 0x836   :  { %v6247_v14 = vpop.f32.mrb[60].mxu0  ;;  %v6269_v15 = vpop.f32.mrb[60].mxu1 }
 0x837   :  { %v6248_v11 = vpop.f32.mrb[61].mxu0  ;;  %v6270_v17 = vpop.f32.mrb[61].mxu1 }
 0x838   :  { %v6249_v16 = vadd.f32 %v6248_v11, %v6247_v14  ;;  %v6250_v18 = vpop.f32.mrb[62].mxu0  ;;  %v6271_v19 = vadd.f32 %v6270_v17, %v6269_v15  ;;  %v6272_v20 = vpop.f32.mrb[62].mxu1 }
 0x839   :  { %v6251_v21 = vpop.f32.mrb[63].mxu0  ;;  %v6273_v22 = vpop.f32.mrb[63].mxu1 }
 0x83a   :  { %v5031_v23 = vadd.f32 %v6271_v19, %v6249_v16 }
 0x83c   :  { %v5036_v25 = vadd.f32 %v5031_v23, %v6884_v33  ;;  %v5066_v33 = vsub.s32 1, %v5061_v35 }
 0x83e   :  { %v5039_v26 = vadd.f32 %v5038_v24, %v5036_v25  ;;  %v5067_v46 = vrot.slane %v5058_v37, %v5066_v33 }
 0x840   :  { %v5040_v27 = vmax.f32 %v5039_v26, 0.0 }
 0x842   :  { %v5041_v28 = vpack.c.bf16 %v5040_v27, %v5040_v27 }
 0x844   :  { %5183 = vmatmul.mubr.bf16.vlgmr.msra.gmra.mrb[64].mxu0 %v5041_v28 }
 0x917   :  { %v5184_v48 = vpop.f32.mrb[64].mxu0 }
 0x918   :  { %v5185_v49 = vadd.f32 %v5184_v48, %v5063_v42  ;;  %v5186_v50 = vpop.f32.mrb[65].mxu0 }
 0x919   :  { %v5187_v38 = vadd.f32 %v5186_v50, %v5067_v46  ;;  %v5188_v51 = vpop.f32.mrb[66].mxu0 }
 0x91a   :  { %v5191_v52 = vmax.f32 %v5185_v49, 0.0  ;;  %v5189_v53 = vpop.f32.mrb[67].mxu0 }
 0x91b   :  { %v5192_v54 = vmax.f32 %v5187_v38, 0.0 }
 0x91c   :  { %v5193_v56 = vpack.c.bf16 %v5191_v52, %v5191_v52 }
 0x91d   :  { %v5194_v55 = vpack.c.bf16 %v5192_v54, %v5192_v54 }
 0x91f   :  { %5362 = vmatprep.mubr.bf16.mxu1 %v5194_v55 }
 0x920   :  { %5363 = vmatmul.mubr.bf16.vlgmr.msra.gmra.mrb[64].mxu1 %v5193_v56 }
 0x9f3   :  { %v6291_v57 = vpop.f32.mrb[64].mxu1 }
 0x9f4   :  { %v6292_v47 = vpop.f32.mrb[65].mxu1 }
 0x9f5   :  { %v6293_v59 = vadd.f32 %v6292_v47, %v6291_v57  ;;  %v6294_v41 = vpop.f32.mrb[66].mxu1 }
 0x9f6   :  { %v6295_v43 = vpop.f32.mrb[67].mxu1 }
 0x9f7   :  { %v5365_v60 = vadd.f32 %v6293_v59, %v5906_v58 }
 0x9f9   :  { %5370 = vst [vmem:[%s6908_s8] sm:$0xff] %v5365_v60 }
 0x9fa   :  { %5375 = vsyncpa [#allocation4], 1 }
 0x9fb   :  { %5376 = vsyncpa [#allocation6], 1 }
 0x9fc   :  { %5377 = vsyncpa [#allocation9], 1 }

</bundles_post_ra>
